<compile_context>
chip_gen: v7x
topology: tpu7x:2x2x1
jax: 0.10.0
libtpu: 0.0.40
codegen_flags: <defaults>
</compile_context>

<pallas_src>
import math

import jax
import jax.numpy as jnp
from jax.experimental import pallas as pl
from jax.experimental.pallas import tpu as pltpu

EPS = 1.1920929e-07  # torch.finfo(float32).eps (F.rms_norm / nn.RMSNorm default)


def _bytes(shape, itemsize):
    return math.prod(shape) * itemsize


def _compiler_params(block_bytes):
    # Explicit scoped-VMEM budget: ~2x double-buffered blocks + headroom,
    # clamped so it is portable across v5e/v6e (128 MiB) and v7x (64 MiB).
    limit = int(min(64 * 1024 * 1024, max(16 * 1024 * 1024, 4 * block_bytes)))
    return pltpu.CompilerParams(
        dimension_semantics=("parallel",),
        vmem_limit_bytes=limit,
    )


def _row_tile(rows):
    """Pick a row tile for the dense (B*T, C) matmul kernels."""
    if rows % 128 == 0:
        return 128                      # MXU-height tiles at realistic sizes
    half = rows // 2
    if rows % 2 == 0 and half % 8 == 0:
        return half                     # >=2 parallel grid steps (v7x: 2 TCs)
    return rows


def make_block_forward(T, C, H, KV, DH, M):
    """Build the fused Block forward for static dims.

    T: seq len, C: embed_dim, H: n_head, KV: n_kv, DH: head_dim, M: mlp_dim.
    """
    DH2 = DH // 2
    group = H // KV
    GT = group * T
    KVD = KV * DH
    scale = 1.0 / math.sqrt(DH)

    def _rms(v):  # RMS over the last axis, no weight (f32)
        return v * jax.lax.rsqrt(jnp.mean(v * v, axis=-1, keepdims=True) + EPS)

    # ---------------- kernel 1: norm1 + Q / KV projections ----------------
    def qkv_kernel(x_ref, g1_ref, wq_ref, bq_ref, wkv_ref, bkv_ref,
                   q_ref, kv_ref):
        xn = _rms(x_ref[...]) * g1_ref[...]              # (TR, C) f32
        xb = xn.astype(jnp.bfloat16)                     # bf16 MXU inputs
        q_ref[...] = jnp.dot(xb, wq_ref[...],
                             preferred_element_type=jnp.float32) + bq_ref[...]
        kv_ref[...] = jnp.dot(xb, wkv_ref[...],
                              preferred_element_type=jnp.float32) + bkv_ref[...]

    # ---------------- kernel 2: GQA attention (heads batched per KV group) --
    def attn_kernel(cq_ref, sq_ref, ck_ref, sk_ref, bias_ref,
                    q_ref, k_ref, v_ref, y_ref):
        def rot(x, c, s):
            # head-index rotary (faithful to the module); vectorized over all
            # heads / rows at once -> a single concat per tensor.
            x1 = x[..., :DH2]
            x2 = x[..., DH2:]
            return jnp.concatenate([x1 * c + x2 * s, x2 * c - x1 * s], axis=-1)

        # q tables carry the 1/sqrt(DH) attention scale (folded in the wrapper)
        qn = rot(_rms(q_ref[...]), cq_ref[...], sq_ref[...])   # (KV, GT, DH)
        kn = rot(_rms(k_ref[...]), ck_ref[...], sk_ref[...])   # (KV, T, DH)

        # one batched score matmul over the KV-group axis
        s = jnp.einsum("gqd,gkd->gqk",
                       qn.astype(jnp.bfloat16), kn.astype(jnp.bfloat16),
                       preferred_element_type=jnp.float32)      # (KV, GT, T)
        s = s + bias_ref[...]
        s = s - jnp.max(s, axis=-1, keepdims=True)
        p = jnp.exp(s)
        p = p * pl.reciprocal(jnp.sum(p, axis=-1, keepdims=True), approx=True)
        # one batched PV matmul
        y_ref[...] = jnp.einsum("gqk,gkd->gqd",
                                p.astype(jnp.bfloat16),
                                v_ref[...].astype(jnp.bfloat16),
                                preferred_element_type=jnp.float32)

    # ---------------- kernel 3: out-proj + residual + norm2 + SiLU MLP ------
    def proj_mlp_kernel(x_ref, y_ref, g2_ref, wp_ref, bp_ref,
                        w1_ref, b1_ref, w2_ref, b2_ref, o_ref):
        attn = jnp.dot(y_ref[...].astype(jnp.bfloat16), wp_ref[...],
                       preferred_element_type=jnp.float32) + bp_ref[...]
        x1 = x_ref[...] + attn
        xn = _rms(x1) * g2_ref[...]
        h = jnp.dot(xn.astype(jnp.bfloat16), w1_ref[...],
                    preferred_element_type=jnp.float32) + b1_ref[...]
        h = h * (1.0 / (1.0 + jnp.exp(-h)))              # SiLU in f32
        o_ref[...] = x1 + jnp.dot(h.astype(jnp.bfloat16), w2_ref[...],
                                  preferred_element_type=jnp.float32) + b2_ref[...]

    # ------------------------------- wrapper --------------------------------
    def forward(x, mask_bool, params):
        B = x.shape[0]
        R = B * T
        TR = _row_tile(R)
        nblk = R // TR
        x2 = x.reshape(R, C)

        # bf16 weight copies for the MXU (halves weight DMA / VMEM footprint)
        wq = params["wq"].astype(jnp.bfloat16)
        wkv = params["wkv"].astype(jnp.bfloat16)
        wp = params["wp"].astype(jnp.bfloat16)
        w1 = params["w1"].astype(jnp.bfloat16)
        w2 = params["w2"].astype(jnp.bfloat16)

        row = lambda i: (i, 0)
        const2 = lambda i: (0, 0)

        # ---- 1) norm1 + QKV projection, batch folded into the row dim ----
        qkv_bytes = (_bytes((TR, C), 4) + _bytes((1, C), 4)
                     + _bytes((C, C), 2) + _bytes((1, C), 4)
                     + _bytes((C, 2 * KVD), 2) + _bytes((1, 2 * KVD), 4)
                     + _bytes((TR, C), 4) + _bytes((TR, 2 * KVD), 4))
        q2, kv2 = pl.pallas_call(
            qkv_kernel,
            out_shape=(jax.ShapeDtypeStruct((R, C), jnp.float32),
                       jax.ShapeDtypeStruct((R, 2 * KVD), jnp.float32)),
            grid=(nblk,),
            in_specs=[
                pl.BlockSpec((TR, C), row),            # x rows
                pl.BlockSpec((1, C), const2),          # g1
                pl.BlockSpec((C, C), const2),          # Wq (bf16)
                pl.BlockSpec((1, C), const2),          # bq
                pl.BlockSpec((C, 2 * KVD), const2),    # Wkv (bf16)
                pl.BlockSpec((1, 2 * KVD), const2),    # bkv
            ],
            out_specs=(pl.BlockSpec((TR, C), row),
                       pl.BlockSpec((TR, 2 * KVD), row)),
            compiler_params=_compiler_params(qkv_bytes),
        )(x2, params["g1"], wq, params["bq"], wkv, params["bkv"])

        # ---- layout plumbing (plain XLA): head-major grouped layout --------
        k2 = kv2[:, :KVD]
        v2 = kv2[:, KVD:]
        qg = (q2.reshape(B, T, KV, group, DH)
                .transpose(0, 2, 3, 1, 4)
                .reshape(B * KV, GT, DH))              # (B*KV, group*T, DH)
        kg = (k2.reshape(B, T, KV, DH)
                .transpose(0, 2, 1, 3)
                .reshape(B * KV, T, DH))
        vg = (v2.reshape(B, T, KV, DH)
                .transpose(0, 2, 1, 3)
                .reshape(B * KV, T, DH))

        # rotary tables laid out to match the grouped layout; rotary position
        # is the head index (faithful to the module), and the 1/sqrt(DH)
        # attention scale is folded into the q tables.
        cq = jnp.broadcast_to(params["cos_q"].reshape(KV, group, 1, DH2) * scale,
                              (KV, group, T, DH2)).reshape(KV, GT, DH2)
        sq = jnp.broadcast_to(params["sin_q"].reshape(KV, group, 1, DH2) * scale,
                              (KV, group, T, DH2)).reshape(KV, GT, DH2)
        ck = jnp.broadcast_to(params["cos_k"][:, None, :], (KV, T, DH2))
        sk = jnp.broadcast_to(params["sin_k"][:, None, :], (KV, T, DH2))

        bias = jnp.where(mask_bool, 0.0, -jnp.inf).astype(jnp.float32)  # (T, T)
        bias_g = jnp.tile(bias, (KV, group, 1))                         # (KV, GT, T)

        # ---- 2) attention --------------------------------------------------
        batch3 = lambda b: (b, 0, 0)
        const3 = lambda b: (0, 0, 0)
        attn_bytes = (2 * _bytes((KV, GT, DH2), 4) + 2 * _bytes((KV, T, DH2), 4)
                      + _bytes((KV, GT, T), 4)
                      + 2 * _bytes((KV, GT, DH), 4) + 2 * _bytes((KV, T, DH), 4))
        yg = pl.pallas_call(
            attn_kernel,
            out_shape=jax.ShapeDtypeStruct((B * KV, GT, DH), jnp.float32),
            grid=(B,),
            in_specs=[
                pl.BlockSpec((KV, GT, DH2), const3),   # cos_q (scaled)
                pl.BlockSpec((KV, GT, DH2), const3),   # sin_q (scaled)
                pl.BlockSpec((KV, T, DH2), const3),    # cos_k
                pl.BlockSpec((KV, T, DH2), const3),    # sin_k
                pl.BlockSpec((KV, GT, T), const3),     # additive mask bias
                pl.BlockSpec((KV, GT, DH), batch3),    # q (grouped)
                pl.BlockSpec((KV, T, DH), batch3),     # k
                pl.BlockSpec((KV, T, DH), batch3),     # v
            ],
            out_specs=pl.BlockSpec((KV, GT, DH), batch3),
            compiler_params=_compiler_params(attn_bytes),
        )(cq, sq, ck, sk, bias_g, qg, kg, vg)

        y2 = (yg.reshape(B, KV, group, T, DH)
                .transpose(0, 3, 1, 2, 4)
                .reshape(R, C))                        # back to (B*T, C)

        # ---- 3) out-proj + residual + norm2 + MLP + residual ---------------
        mlp_bytes = (3 * _bytes((TR, C), 4) + 3 * _bytes((1, C), 4)
                     + _bytes((C, C), 2) + _bytes((C, M), 2)
                     + _bytes((1, M), 4) + _bytes((M, C), 2))
        out2 = pl.pallas_call(
            proj_mlp_kernel,
            out_shape=jax.ShapeDtypeStruct((R, C), jnp.float32),
            grid=(nblk,),
            in_specs=[
                pl.BlockSpec((TR, C), row),            # x rows (residual)
                pl.BlockSpec((TR, C), row),            # attention output rows
                pl.BlockSpec((1, C), const2),          # g2
                pl.BlockSpec((C, C), const2),          # Wp (bf16)
                pl.BlockSpec((1, C), const2),          # bp
                pl.BlockSpec((C, M), const2),          # W1 (bf16)
                pl.BlockSpec((1, M), const2),          # b1
                pl.BlockSpec((M, C), const2),          # W2 (bf16)
                pl.BlockSpec((1, C), const2),          # b2
            ],
            out_specs=pl.BlockSpec((TR, C), row),
            compiler_params=_compiler_params(mlp_bytes),
        )(x2, y2, params["g2"], wp, params["bp"],
          w1, params["b1"], w2, params["b2"])

        return out2.reshape(B, T, C)

    return jax.jit(forward)


def rotary_tables(dim, n_pos):
    """cos/sin tables for positions 0..n_pos-1 (the module indexes rotary by
    the head axis, so n_pos is the number of heads, not the sequence len)."""
    n4 = dim // 4
    angular_freq = (1.0 / 1024.0) ** jnp.linspace(0.0, 1.0, n4, dtype=jnp.float32)
    angular_freq = jnp.concatenate([angular_freq, jnp.zeros((n4,), jnp.float32)])
    t = jnp.arange(n_pos, dtype=jnp.float32)
    theta = t[:, None] * angular_freq[None, :]          # (n_pos, dim//2)
    return jnp.cos(theta), jnp.sin(theta)


def init_params(key, C, H, KV, DH, M):
    def linear(key, fan_in, fan_out):
        kw, kb = jax.random.split(key)
        bound = 1.0 / math.sqrt(fan_in)
        w = jax.random.uniform(kw, (fan_in, fan_out), jnp.float32, -bound, bound)
        b = jax.random.uniform(kb, (1, fan_out), jnp.float32, -bound, bound)
        return w, b

    keys = jax.random.split(key, 4)
    wq, bq = linear(keys[0], C, C)
    wkv, bkv = linear(keys[1], C, 2 * KV * DH)
    wp, bp = linear(keys[2], C, C)
    k1, k2 = jax.random.split(keys[3])
    w1, b1 = linear(k1, C, M)
    w2, b2 = linear(k2, M, C)

    cos_q, sin_q = rotary_tables(DH, H)
    cos_k, sin_k = rotary_tables(DH, KV)

    return dict(
        g1=jnp.ones((1, C), jnp.float32),   # nn.RMSNorm weight init
        g2=jnp.ones((1, C), jnp.float32),
        wq=wq, bq=bq, wkv=wkv, bkv=bkv, wp=wp, bp=bp,
        w1=w1, b1=b1, w2=w2, b2=b2,
        cos_q=cos_q, sin_q=sin_q, cos_k=cos_k, sin_k=sin_k,
    )


def reference_forward(x, mask, params, H, KV, DH):
    """Pure-JAX f32 reference mirroring the PyTorch module (for validation)."""
    B, T, C = x.shape
    group = H // KV

    def rms(v):
        return v * jax.lax.rsqrt(jnp.mean(v * v, axis=-1, keepdims=True) + EPS)

    xn = rms(x) * params["g1"][0]
    q = xn @ params["wq"] + params["bq"][0]
    kv = xn @ params["wkv"] + params["bkv"][0]
    k, v = kv[..., :KV * DH], kv[..., KV * DH:]
    q = q.reshape(B, T, H, DH).transpose(0, 2, 1, 3)
    k = k.reshape(B, T, KV, DH).transpose(0, 2, 1, 3)
    v = v.reshape(B, T, KV, DH).transpose(0, 2, 1, 3)
    q, k = rms(q), rms(k)

    def rot(xh, cos_t, sin_t):
        c = cos_t[None, :, None, :]
        s = sin_t[None, :, None, :]
        x1, x2 = xh[..., :DH // 2], xh[..., DH // 2:]
        return jnp.concatenate([x1 * c + x2 * s, -x1 * s + x2 * c], axis=-1)

    q = rot(q, params["cos_q"], params["sin_q"])
    k = rot(k, params["cos_k"], params["sin_k"])
    k = jnp.repeat(k, group, axis=1)
    v = jnp.repeat(v, group, axis=1)
    bias = jnp.where(mask, 0.0, -jnp.inf)
    s = jnp.einsum("bhqd,bhkd->bhqk", q, k) / jnp.sqrt(float(DH)) + bias
    p = jax.nn.softmax(s, axis=-1)
    y = jnp.einsum("bhqk,bhkd->bhqd", p, v)
    y = y.transpose(0, 2, 1, 3).reshape(B, T, C)
    x1 = x + (y @ params["wp"] + params["bp"][0])
    xn2 = rms(x1) * params["g2"][0]
    h = xn2 @ params["w1"] + params["b1"][0]
    h = h * jax.nn.sigmoid(h)
    return x1 + (h @ params["w2"] + params["b2"][0])


if __name__ == "__main__":
    # Small config consistent with the module's constraints:
    # embed_dim % n_head == 0, n_head % n_kv == 0.
    B, T, C = 2, 16, 128
    H, KV = 8, 2
    DH = C // H          # 16
    M = 4 * C            # 512 mlp_dim

    key = jax.random.PRNGKey(0)
    kx, kp = jax.random.split(key)
    x = jax.random.normal(kx, (B, T, C), dtype=jnp.float32)
    mask = jnp.tril(jnp.ones((T, T), dtype=bool))   # causal boolean mask

    params = init_params(kp, C, H, KV, DH, M)
    block_forward = make_block_forward(T, C, H, KV, DH, M)

    out = jax.block_until_ready(block_forward(x, mask, params))

    assert out.shape == (B, T, C)
    assert bool(jnp.all(jnp.isfinite(out)))

    # Validate against a pure-JAX f32 reference (bf16 MXU inputs -> small,
    # bounded mismatch; layout/semantic bugs would show up as O(1) errors).
    ref = reference_forward(x, mask, params, H, KV, DH)
    rel = float(jnp.sqrt(jnp.sum((out - ref) ** 2) / jnp.sum(ref ** 2)))
    assert rel < 5e-2, f"kernel/reference mismatch: rel_err={rel}"

    print("KERNEL_OK")
</pallas_src>

<mosaic_0001>
module attributes {stable_mosaic.version = 11 : i64} {
  func.func @qkv_kernel(%arg0: i32, %arg1: memref<16x128xf32, #tpu.memory_space<vmem>>, %arg2: memref<1x128xf32, #tpu.memory_space<vmem>>, %arg3: memref<128x128xbf16, #tpu.memory_space<vmem>>, %arg4: memref<1x128xf32, #tpu.memory_space<vmem>>, %arg5: memref<128x64xbf16, #tpu.memory_space<vmem>>, %arg6: memref<1x64xf32, #tpu.memory_space<vmem>>, %arg7: memref<16x128xf32, #tpu.memory_space<vmem>>, %arg8: memref<16x64xf32, #tpu.memory_space<vmem>>) attributes {dimension_semantics = [#tpu.dimension_semantics<parallel>], iteration_bounds = array<i64: 2>, scalar_prefetch = 0 : i64, scratch_operands = 0 : i64, tpu.core_type = #tpu.core_type<tc>, window_params = [{transform_indices = @transform_0, window_bounds = array<i64: 16, 128>}, {pipeline_mode = #tpu.pipeline_mode<synchronous>, transform_indices = @transform_1, window_bounds = array<i64: 1, 128>}, {pipeline_mode = #tpu.pipeline_mode<synchronous>, transform_indices = @transform_2, window_bounds = array<i64: 128, 128>}, {pipeline_mode = #tpu.pipeline_mode<synchronous>, transform_indices = @transform_3, window_bounds = array<i64: 1, 128>}, {pipeline_mode = #tpu.pipeline_mode<synchronous>, transform_indices = @transform_4, window_bounds = array<i64: 128, 64>}, {pipeline_mode = #tpu.pipeline_mode<synchronous>, transform_indices = @transform_5, window_bounds = array<i64: 1, 64>}, {transform_indices = @transform_6, window_bounds = array<i64: 16, 128>}, {transform_indices = @transform_7, window_bounds = array<i64: 16, 64>}]} {
    %c0 = arith.constant 0 : index
    %c0_0 = arith.constant 0 : index
    %0 = vector.load %arg1[%c0, %c0_0] : memref<16x128xf32, #tpu.memory_space<vmem>>, vector<16x128xf32>
    %1 = arith.mulf %0, %0 : vector<16x128xf32>
    %cst = arith.constant dense<0.000000e+00> : vector<16xf32>
    %2 = vector.multi_reduction <add>, %1, %cst [1] : vector<16x128xf32> to vector<16xf32>
    %3 = vector.shape_cast %2 : vector<16xf32> to vector<16x1xf32>
    %cst_1 = arith.constant 1.280000e+02 : f32
    %4 = vector.broadcast %cst_1 : f32 to vector<16x1xf32>
    %5 = arith.divf %3, %4 : vector<16x1xf32>
    %cst_2 = arith.constant 1.1920929E-7 : f32
    %6 = vector.broadcast %cst_2 : f32 to vector<16x1xf32>
    %7 = arith.addf %5, %6 : vector<16x1xf32>
    %8 = math.rsqrt %7 : vector<16x1xf32>
    %9 = vector.broadcast %8 : vector<16x1xf32> to vector<16x128xf32>
    %10 = arith.mulf %0, %9 : vector<16x128xf32>
    %c0_3 = arith.constant 0 : index
    %c0_4 = arith.constant 0 : index
    %11 = vector.load %arg2[%c0_3, %c0_4] : memref<1x128xf32, #tpu.memory_space<vmem>>, vector<1x128xf32>
    %12 = vector.broadcast %11 : vector<1x128xf32> to vector<16x128xf32>
    %13 = arith.mulf %10, %12 : vector<16x128xf32>
    %14 = arith.truncf %13 : vector<16x128xf32> to vector<16x128xbf16>
    %c0_5 = arith.constant 0 : index
    %c0_6 = arith.constant 0 : index
    %15 = vector.load %arg3[%c0_5, %c0_6] : memref<128x128xbf16, #tpu.memory_space<vmem>>, vector<128x128xbf16>
    %cst_7 = arith.constant dense<0.000000e+00> : vector<16x128xf32>
    %16 = tpu.matmul %14, %15, %cst_7 {dimension_numbers = #tpu.dot_dimension_numbers<[1], [0], [0], [1], [0, 0, 1, 1], [], []>} : vector<16x128xbf16>, vector<128x128xbf16>, vector<16x128xf32> -> vector<16x128xf32>
    %c0_8 = arith.constant 0 : index
    %c0_9 = arith.constant 0 : index
    %17 = vector.load %arg4[%c0_8, %c0_9] : memref<1x128xf32, #tpu.memory_space<vmem>>, vector<1x128xf32>
    %18 = vector.broadcast %17 : vector<1x128xf32> to vector<16x128xf32>
    %19 = arith.addf %16, %18 : vector<16x128xf32>
    %c0_10 = arith.constant 0 : index
    %c0_11 = arith.constant 0 : index
    %20 = vector.load %arg7[%c0_10, %c0_11] : memref<16x128xf32, #tpu.memory_space<vmem>>, vector<16x128xf32>
    tpu.vector_store %arg7[%c0_10, %c0_11], %19 {strides = array<i32>} : memref<16x128xf32, #tpu.memory_space<vmem>>, vector<16x128xf32>,
    %c0_12 = arith.constant 0 : index
    %c0_13 = arith.constant 0 : index
    %21 = vector.load %arg5[%c0_12, %c0_13] : memref<128x64xbf16, #tpu.memory_space<vmem>>, vector<128x64xbf16>
    %cst_14 = arith.constant dense<0.000000e+00> : vector<16x64xf32>
    %22 = tpu.matmul %14, %21, %cst_14 {dimension_numbers = #tpu.dot_dimension_numbers<[1], [0], [0], [1], [0, 0, 1, 1], [], []>} : vector<16x128xbf16>, vector<128x64xbf16>, vector<16x64xf32> -> vector<16x64xf32>
    %c0_15 = arith.constant 0 : index
    %c0_16 = arith.constant 0 : index
    %23 = vector.load %arg6[%c0_15, %c0_16] : memref<1x64xf32, #tpu.memory_space<vmem>>, vector<1x64xf32>
    %24 = vector.broadcast %23 : vector<1x64xf32> to vector<16x64xf32>
    %25 = arith.addf %22, %24 : vector<16x64xf32>
    %c0_17 = arith.constant 0 : index
    %c0_18 = arith.constant 0 : index
    %26 = vector.load %arg8[%c0_17, %c0_18] : memref<16x64xf32, #tpu.memory_space<vmem>>, vector<16x64xf32>
    tpu.vector_store %arg8[%c0_17, %c0_18], %25 {strides = array<i32>} : memref<16x64xf32, #tpu.memory_space<vmem>>, vector<16x64xf32>,
    return
  }
  func.func @transform_0(%arg0: i32) -> (i32, i32) {
    %c0_i32 = arith.constant 0 : i32
    %c0_i32_0 = arith.constant 0 : i32
    return %arg0, %c0_i32 : i32, i32
  }
  func.func @transform_1(%arg0: i32) -> (i32, i32) {
    %c0_i32 = arith.constant 0 : i32
    %c0_i32_0 = arith.constant 0 : i32
    %c0_i32_1 = arith.constant 0 : i32
    return %c0_i32, %c0_i32_0 : i32, i32
  }
  func.func @transform_2(%arg0: i32) -> (i32, i32) {
    %c0_i32 = arith.constant 0 : i32
    %c0_i32_0 = arith.constant 0 : i32
    %c0_i32_1 = arith.constant 0 : i32
    return %c0_i32, %c0_i32_0 : i32, i32
  }
  func.func @transform_3(%arg0: i32) -> (i32, i32) {
    %c0_i32 = arith.constant 0 : i32
    %c0_i32_0 = arith.constant 0 : i32
    %c0_i32_1 = arith.constant 0 : i32
    return %c0_i32, %c0_i32_0 : i32, i32
  }
  func.func @transform_4(%arg0: i32) -> (i32, i32) {
    %c0_i32 = arith.constant 0 : i32
    %c0_i32_0 = arith.constant 0 : i32
    %c0_i32_1 = arith.constant 0 : i32
    return %c0_i32, %c0_i32_0 : i32, i32
  }
  func.func @transform_5(%arg0: i32) -> (i32, i32) {
    %c0_i32 = arith.constant 0 : i32
    %c0_i32_0 = arith.constant 0 : i32
    %c0_i32_1 = arith.constant 0 : i32
    return %c0_i32, %c0_i32_0 : i32, i32
  }
  func.func @transform_6(%arg0: i32) -> (i32, i32) {
    %c0_i32 = arith.constant 0 : i32
    %c0_i32_0 = arith.constant 0 : i32
    return %arg0, %c0_i32 : i32, i32
  }
  func.func @transform_7(%arg0: i32) -> (i32, i32) {
    %c0_i32 = arith.constant 0 : i32
    %c0_i32_0 = arith.constant 0 : i32
    return %arg0, %c0_i32 : i32, i32
  }
}

module attributes {stable_mosaic.version = 11 : i64} {
  func.func @attn_kernel(%arg0: i32, %arg1: memref<2x64x8xf32, #tpu.memory_space<vmem>>, %arg2: memref<2x64x8xf32, #tpu.memory_space<vmem>>, %arg3: memref<2x16x8xf32, #tpu.memory_space<vmem>>, %arg4: memref<2x16x8xf32, #tpu.memory_space<vmem>>, %arg5: memref<2x64x16xf32, #tpu.memory_space<vmem>>, %arg6: memref<2x64x16xf32, #tpu.memory_space<vmem>>, %arg7: memref<2x16x16xf32, #tpu.memory_space<vmem>>, %arg8: memref<2x16x16xf32, #tpu.memory_space<vmem>>, %arg9: memref<2x64x16xf32, #tpu.memory_space<vmem>>) attributes {dimension_semantics = [#tpu.dimension_semantics<parallel>], iteration_bounds = array<i64: 2>, scalar_prefetch = 0 : i64, scratch_operands = 0 : i64, tpu.core_type = #tpu.core_type<tc>, window_params = [{pipeline_mode = #tpu.pipeline_mode<synchronous>, transform_indices = @transform_0, window_bounds = array<i64: 2, 64, 8>}, {pipeline_mode = #tpu.pipeline_mode<synchronous>, transform_indices = @transform_1, window_bounds = array<i64: 2, 64, 8>}, {pipeline_mode = #tpu.pipeline_mode<synchronous>, transform_indices = @transform_2, window_bounds = array<i64: 2, 16, 8>}, {pipeline_mode = #tpu.pipeline_mode<synchronous>, transform_indices = @transform_3, window_bounds = array<i64: 2, 16, 8>}, {pipeline_mode = #tpu.pipeline_mode<synchronous>, transform_indices = @transform_4, window_bounds = array<i64: 2, 64, 16>}, {transform_indices = @transform_5, window_bounds = array<i64: 2, 64, 16>}, {transform_indices = @transform_6, window_bounds = array<i64: 2, 16, 16>}, {transform_indices = @transform_7, window_bounds = array<i64: 2, 16, 16>}, {transform_indices = @transform_8, window_bounds = array<i64: 2, 64, 16>}]} {
    %c0 = arith.constant 0 : index
    %c0_0 = arith.constant 0 : index
    %c0_1 = arith.constant 0 : index
    %0 = vector.load %arg6[%c0, %c0_0, %c0_1] : memref<2x64x16xf32, #tpu.memory_space<vmem>>, vector<2x64x16xf32>
    %1 = arith.mulf %0, %0 : vector<2x64x16xf32>
    %cst = arith.constant dense<0.000000e+00> : vector<2x64xf32>
    %2 = vector.multi_reduction <add>, %1, %cst [2] : vector<2x64x16xf32> to vector<2x64xf32>
    %3 = vector.shape_cast %2 : vector<2x64xf32> to vector<2x64x1xf32>
    %cst_2 = arith.constant 1.600000e+01 : f32
    %4 = vector.broadcast %cst_2 : f32 to vector<2x64x1xf32>
    %5 = arith.divf %3, %4 : vector<2x64x1xf32>
    %cst_3 = arith.constant 1.1920929E-7 : f32
    %6 = vector.broadcast %cst_3 : f32 to vector<2x64x1xf32>
    %7 = arith.addf %5, %6 : vector<2x64x1xf32>
    %8 = math.rsqrt %7 : vector<2x64x1xf32>
    %9 = vector.broadcast %8 : vector<2x64x1xf32> to vector<2x64x16xf32>
    %10 = arith.mulf %0, %9 : vector<2x64x16xf32>
    %c0_4 = arith.constant 0 : index
    %c0_5 = arith.constant 0 : index
    %c0_6 = arith.constant 0 : index
    %11 = vector.load %arg1[%c0_4, %c0_5, %c0_6] : memref<2x64x8xf32, #tpu.memory_space<vmem>>, vector<2x64x8xf32>
    %c0_7 = arith.constant 0 : index
    %c0_8 = arith.constant 0 : index
    %c0_9 = arith.constant 0 : index
    %12 = vector.load %arg2[%c0_7, %c0_8, %c0_9] : memref<2x64x8xf32, #tpu.memory_space<vmem>>, vector<2x64x8xf32>
    %13 = vector.extract_strided_slice %10 {offsets = [0, 0, 0], sizes = [2, 64, 8], strides = [1, 1, 1]} : vector<2x64x16xf32> to vector<2x64x8xf32>
    %14 = vector.extract_strided_slice %10 {offsets = [0, 0, 8], sizes = [2, 64, 8], strides = [1, 1, 1]} : vector<2x64x16xf32> to vector<2x64x8xf32>
    %15 = arith.mulf %13, %11 : vector<2x64x8xf32>
    %16 = arith.mulf %14, %12 : vector<2x64x8xf32>
    %17 = arith.addf %15, %16 : vector<2x64x8xf32>
    %18 = arith.mulf %14, %11 : vector<2x64x8xf32>
    %19 = arith.mulf %13, %12 : vector<2x64x8xf32>
    %20 = arith.subf %18, %19 : vector<2x64x8xf32>
    %21 = tpu.concatenate %17, %20 in 2 : vector<2x64x8xf32>, vector<2x64x8xf32> -> vector<2x64x16xf32>
    %c0_10 = arith.constant 0 : index
    %c0_11 = arith.constant 0 : index
    %c0_12 = arith.constant 0 : index
    %22 = vector.load %arg7[%c0_10, %c0_11, %c0_12] : memref<2x16x16xf32, #tpu.memory_space<vmem>>, vector<2x16x16xf32>
    %23 = arith.mulf %22, %22 : vector<2x16x16xf32>
    %cst_13 = arith.constant dense<0.000000e+00> : vector<2x16xf32>
    %24 = vector.multi_reduction <add>, %23, %cst_13 [2] : vector<2x16x16xf32> to vector<2x16xf32>
    %25 = vector.shape_cast %24 : vector<2x16xf32> to vector<2x16x1xf32>
    %cst_14 = arith.constant 1.600000e+01 : f32
    %26 = vector.broadcast %cst_14 : f32 to vector<2x16x1xf32>
    %27 = arith.divf %25, %26 : vector<2x16x1xf32>
    %cst_15 = arith.constant 1.1920929E-7 : f32
    %28 = vector.broadcast %cst_15 : f32 to vector<2x16x1xf32>
    %29 = arith.addf %27, %28 : vector<2x16x1xf32>
    %30 = math.rsqrt %29 : vector<2x16x1xf32>
    %31 = vector.broadcast %30 : vector<2x16x1xf32> to vector<2x16x16xf32>
    %32 = arith.mulf %22, %31 : vector<2x16x16xf32>
    %c0_16 = arith.constant 0 : index
    %c0_17 = arith.constant 0 : index
    %c0_18 = arith.constant 0 : index
    %33 = vector.load %arg3[%c0_16, %c0_17, %c0_18] : memref<2x16x8xf32, #tpu.memory_space<vmem>>, vector<2x16x8xf32>
    %c0_19 = arith.constant 0 : index
    %c0_20 = arith.constant 0 : index
    %c0_21 = arith.constant 0 : index
    %34 = vector.load %arg4[%c0_19, %c0_20, %c0_21] : memref<2x16x8xf32, #tpu.memory_space<vmem>>, vector<2x16x8xf32>
    %35 = vector.extract_strided_slice %32 {offsets = [0, 0, 0], sizes = [2, 16, 8], strides = [1, 1, 1]} : vector<2x16x16xf32> to vector<2x16x8xf32>
    %36 = vector.extract_strided_slice %32 {offsets = [0, 0, 8], sizes = [2, 16, 8], strides = [1, 1, 1]} : vector<2x16x16xf32> to vector<2x16x8xf32>
    %37 = arith.mulf %35, %33 : vector<2x16x8xf32>
    %38 = arith.mulf %36, %34 : vector<2x16x8xf32>
    %39 = arith.addf %37, %38 : vector<2x16x8xf32>
    %40 = arith.mulf %36, %33 : vector<2x16x8xf32>
    %41 = arith.mulf %35, %34 : vector<2x16x8xf32>
    %42 = arith.subf %40, %41 : vector<2x16x8xf32>
    %43 = tpu.concatenate %39, %42 in 2 : vector<2x16x8xf32>, vector<2x16x8xf32> -> vector<2x16x16xf32>
    %44 = arith.truncf %21 : vector<2x64x16xf32> to vector<2x64x16xbf16>
    %45 = arith.truncf %43 : vector<2x16x16xf32> to vector<2x16x16xbf16>
    "tpu.trace_start"() <{level = 10 : i32, message = "gqd,gkd->gqk"}> : () -> ()
    %cst_22 = arith.constant dense<0.000000e+00> : vector<2x64x16xf32>
    %46 = tpu.matmul %44, %45, %cst_22 {dimension_numbers = #tpu.dot_dimension_numbers<[2], [2], [1], [1], [0, 0, 0, 1, 1, 1], [0], [0]>} : vector<2x64x16xbf16>, vector<2x16x16xbf16>, vector<2x64x16xf32> -> vector<2x64x16xf32>
    "tpu.trace_stop"() : () -> ()
    %c0_23 = arith.constant 0 : index
    %c0_24 = arith.constant 0 : index
    %c0_25 = arith.constant 0 : index
    %47 = vector.load %arg5[%c0_23, %c0_24, %c0_25] : memref<2x64x16xf32, #tpu.memory_space<vmem>>, vector<2x64x16xf32>
    %48 = arith.addf %46, %47 : vector<2x64x16xf32>
    %cst_26 = arith.constant dense<0xFF800000> : vector<2x64xf32>
    %49 = vector.multi_reduction <maximumf>, %48, %cst_26 [2] : vector<2x64x16xf32> to vector<2x64xf32>
    %50 = vector.shape_cast %49 : vector<2x64xf32> to vector<2x64x1xf32>
    %51 = vector.broadcast %50 : vector<2x64x1xf32> to vector<2x64x16xf32>
    %52 = arith.subf %48, %51 : vector<2x64x16xf32>
    %53 = math.exp %52 : vector<2x64x16xf32>
    %cst_27 = arith.constant dense<0.000000e+00> : vector<2x64xf32>
    %54 = vector.multi_reduction <add>, %53, %cst_27 [2] : vector<2x64x16xf32> to vector<2x64xf32>
    %55 = vector.shape_cast %54 : vector<2x64xf32> to vector<2x64x1xf32>
    %56 = tpu.reciprocal %55 {approx = true} : vector<2x64x1xf32> -> vector<2x64x1xf32>
    %57 = vector.broadcast %56 : vector<2x64x1xf32> to vector<2x64x16xf32>
    %58 = arith.mulf %53, %57 : vector<2x64x16xf32>
    %59 = arith.truncf %58 : vector<2x64x16xf32> to vector<2x64x16xbf16>
    %c0_28 = arith.constant 0 : index
    %c0_29 = arith.constant 0 : index
    %c0_30 = arith.constant 0 : index
    %60 = vector.load %arg8[%c0_28, %c0_29, %c0_30] : memref<2x16x16xf32, #tpu.memory_space<vmem>>, vector<2x16x16xf32>
    %61 = arith.truncf %60 : vector<2x16x16xf32> to vector<2x16x16xbf16>
    "tpu.trace_start"() <{level = 10 : i32, message = "gqk,gkd->gqd"}> : () -> ()
    %cst_31 = arith.constant dense<0.000000e+00> : vector<2x64x16xf32>
    %62 = tpu.matmul %59, %61, %cst_31 {dimension_numbers = #tpu.dot_dimension_numbers<[2], [1], [1], [2], [0, 0, 0, 1, 1, 2], [0], [0]>} : vector<2x64x16xbf16>, vector<2x16x16xbf16>, vector<2x64x16xf32> -> vector<2x64x16xf32>
    "tpu.trace_stop"() : () -> ()
    %c0_32 = arith.constant 0 : index
    %c0_33 = arith.constant 0 : index
    %c0_34 = arith.constant 0 : index
    %63 = vector.load %arg9[%c0_32, %c0_33, %c0_34] : memref<2x64x16xf32, #tpu.memory_space<vmem>>, vector<2x64x16xf32>
    tpu.vector_store %arg9[%c0_32, %c0_33, %c0_34], %62 {strides = array<i32>} : memref<2x64x16xf32, #tpu.memory_space<vmem>>, vector<2x64x16xf32>,
    return
  }
  func.func @transform_0(%arg0: i32) -> (i32, i32, i32) {
    %c0_i32 = arith.constant 0 : i32
    %c0_i32_0 = arith.constant 0 : i32
    %c0_i32_1 = arith.constant 0 : i32
    %c0_i32_2 = arith.constant 0 : i32
    return %c0_i32, %c0_i32_0, %c0_i32_1 : i32, i32, i32
  }
  func.func @transform_1(%arg0: i32) -> (i32, i32, i32) {
    %c0_i32 = arith.constant 0 : i32
    %c0_i32_0 = arith.constant 0 : i32
    %c0_i32_1 = arith.constant 0 : i32
    %c0_i32_2 = arith.constant 0 : i32
    return %c0_i32, %c0_i32_0, %c0_i32_1 : i32, i32, i32
  }
  func.func @transform_2(%arg0: i32) -> (i32, i32, i32) {
    %c0_i32 = arith.constant 0 : i32
    %c0_i32_0 = arith.constant 0 : i32
    %c0_i32_1 = arith.constant 0 : i32
    %c0_i32_2 = arith.constant 0 : i32
    return %c0_i32, %c0_i32_0, %c0_i32_1 : i32, i32, i32
  }
  func.func @transform_3(%arg0: i32) -> (i32, i32, i32) {
    %c0_i32 = arith.constant 0 : i32
    %c0_i32_0 = arith.constant 0 : i32
    %c0_i32_1 = arith.constant 0 : i32
    %c0_i32_2 = arith.constant 0 : i32
    return %c0_i32, %c0_i32_0, %c0_i32_1 : i32, i32, i32
  }
  func.func @transform_4(%arg0: i32) -> (i32, i32, i32) {
    %c0_i32 = arith.constant 0 : i32
    %c0_i32_0 = arith.constant 0 : i32
    %c0_i32_1 = arith.constant 0 : i32
    %c0_i32_2 = arith.constant 0 : i32
    return %c0_i32, %c0_i32_0, %c0_i32_1 : i32, i32, i32
  }
  func.func @transform_5(%arg0: i32) -> (i32, i32, i32) {
    %c0_i32 = arith.constant 0 : i32
    %c0_i32_0 = arith.constant 0 : i32
    %c0_i32_1 = arith.constant 0 : i32
    return %arg0, %c0_i32, %c0_i32_0 : i32, i32, i32
  }
  func.func @transform_6(%arg0: i32) -> (i32, i32, i32) {
    %c0_i32 = arith.constant 0 : i32
    %c0_i32_0 = arith.constant 0 : i32
    %c0_i32_1 = arith.constant 0 : i32
    return %arg0, %c0_i32, %c0_i32_0 : i32, i32, i32
  }
  func.func @transform_7(%arg0: i32) -> (i32, i32, i32) {
    %c0_i32 = arith.constant 0 : i32
    %c0_i32_0 = arith.constant 0 : i32
    %c0_i32_1 = arith.constant 0 : i32
    return %arg0, %c0_i32, %c0_i32_0 : i32, i32, i32
  }
  func.func @transform_8(%arg0: i32) -> (i32, i32, i32) {
    %c0_i32 = arith.constant 0 : i32
    %c0_i32_0 = arith.constant 0 : i32
    %c0_i32_1 = arith.constant 0 : i32
    return %arg0, %c0_i32, %c0_i32_0 : i32, i32, i32
  }
}

module attributes {stable_mosaic.version = 11 : i64} {
  func.func @proj_mlp_kernel(%arg0: i32, %arg1: memref<16x128xf32, #tpu.memory_space<vmem>>, %arg2: memref<16x128xf32, #tpu.memory_space<vmem>>, %arg3: memref<1x128xf32, #tpu.memory_space<vmem>>, %arg4: memref<128x128xbf16, #tpu.memory_space<vmem>>, %arg5: memref<1x128xf32, #tpu.memory_space<vmem>>, %arg6: memref<128x512xbf16, #tpu.memory_space<vmem>>, %arg7: memref<1x512xf32, #tpu.memory_space<vmem>>, %arg8: memref<512x128xbf16, #tpu.memory_space<vmem>>, %arg9: memref<1x128xf32, #tpu.memory_space<vmem>>, %arg10: memref<16x128xf32, #tpu.memory_space<vmem>>) attributes {dimension_semantics = [#tpu.dimension_semantics<parallel>], iteration_bounds = array<i64: 2>, scalar_prefetch = 0 : i64, scratch_operands = 0 : i64, tpu.core_type = #tpu.core_type<tc>, window_params = [{transform_indices = @transform_0, window_bounds = array<i64: 16, 128>}, {transform_indices = @transform_1, window_bounds = array<i64: 16, 128>}, {pipeline_mode = #tpu.pipeline_mode<synchronous>, transform_indices = @transform_2, window_bounds = array<i64: 1, 128>}, {pipeline_mode = #tpu.pipeline_mode<synchronous>, transform_indices = @transform_3, window_bounds = array<i64: 128, 128>}, {pipeline_mode = #tpu.pipeline_mode<synchronous>, transform_indices = @transform_4, window_bounds = array<i64: 1, 128>}, {pipeline_mode = #tpu.pipeline_mode<synchronous>, transform_indices = @transform_5, window_bounds = array<i64: 128, 512>}, {pipeline_mode = #tpu.pipeline_mode<synchronous>, transform_indices = @transform_6, window_bounds = array<i64: 1, 512>}, {pipeline_mode = #tpu.pipeline_mode<synchronous>, transform_indices = @transform_7, window_bounds = array<i64: 512, 128>}, {pipeline_mode = #tpu.pipeline_mode<synchronous>, transform_indices = @transform_8, window_bounds = array<i64: 1, 128>}, {transform_indices = @transform_9, window_bounds = array<i64: 16, 128>}]} {
    %c0 = arith.constant 0 : index
    %c0_0 = arith.constant 0 : index
    %0 = vector.load %arg2[%c0, %c0_0] : memref<16x128xf32, #tpu.memory_space<vmem>>, vector<16x128xf32>
    %1 = arith.truncf %0 : vector<16x128xf32> to vector<16x128xbf16>
    %c0_1 = arith.constant 0 : index
    %c0_2 = arith.constant 0 : index
    %2 = vector.load %arg4[%c0_1, %c0_2] : memref<128x128xbf16, #tpu.memory_space<vmem>>, vector<128x128xbf16>
    %cst = arith.constant dense<0.000000e+00> : vector<16x128xf32>
    %3 = tpu.matmul %1, %2, %cst {dimension_numbers = #tpu.dot_dimension_numbers<[1], [0], [0], [1], [0, 0, 1, 1], [], []>} : vector<16x128xbf16>, vector<128x128xbf16>, vector<16x128xf32> -> vector<16x128xf32>
    %c0_3 = arith.constant 0 : index
    %c0_4 = arith.constant 0 : index
    %4 = vector.load %arg5[%c0_3, %c0_4] : memref<1x128xf32, #tpu.memory_space<vmem>>, vector<1x128xf32>
    %5 = vector.broadcast %4 : vector<1x128xf32> to vector<16x128xf32>
    %6 = arith.addf %3, %5 : vector<16x128xf32>
    %c0_5 = arith.constant 0 : index
    %c0_6 = arith.constant 0 : index
    %7 = vector.load %arg1[%c0_5, %c0_6] : memref<16x128xf32, #tpu.memory_space<vmem>>, vector<16x128xf32>
    %8 = arith.addf %7, %6 : vector<16x128xf32>
    %9 = arith.mulf %8, %8 : vector<16x128xf32>
    %cst_7 = arith.constant dense<0.000000e+00> : vector<16xf32>
    %10 = vector.multi_reduction <add>, %9, %cst_7 [1] : vector<16x128xf32> to vector<16xf32>
    %11 = vector.shape_cast %10 : vector<16xf32> to vector<16x1xf32>
    %cst_8 = arith.constant 1.280000e+02 : f32
    %12 = vector.broadcast %cst_8 : f32 to vector<16x1xf32>
    %13 = arith.divf %11, %12 : vector<16x1xf32>
    %cst_9 = arith.constant 1.1920929E-7 : f32
    %14 = vector.broadcast %cst_9 : f32 to vector<16x1xf32>
    %15 = arith.addf %13, %14 : vector<16x1xf32>
    %16 = math.rsqrt %15 : vector<16x1xf32>
    %17 = vector.broadcast %16 : vector<16x1xf32> to vector<16x128xf32>
    %18 = arith.mulf %8, %17 : vector<16x128xf32>
    %c0_10 = arith.constant 0 : index
    %c0_11 = arith.constant 0 : index
    %19 = vector.load %arg3[%c0_10, %c0_11] : memref<1x128xf32, #tpu.memory_space<vmem>>, vector<1x128xf32>
    %20 = vector.broadcast %19 : vector<1x128xf32> to vector<16x128xf32>
    %21 = arith.mulf %18, %20 : vector<16x128xf32>
    %22 = arith.truncf %21 : vector<16x128xf32> to vector<16x128xbf16>
    %c0_12 = arith.constant 0 : index
    %c0_13 = arith.constant 0 : index
    %23 = vector.load %arg6[%c0_12, %c0_13] : memref<128x512xbf16, #tpu.memory_space<vmem>>, vector<128x512xbf16>
    %cst_14 = arith.constant dense<0.000000e+00> : vector<16x512xf32>
    %24 = tpu.matmul %22, %23, %cst_14 {dimension_numbers = #tpu.dot_dimension_numbers<[1], [0], [0], [1], [0, 0, 1, 1], [], []>} : vector<16x128xbf16>, vector<128x512xbf16>, vector<16x512xf32> -> vector<16x512xf32>
    %c0_15 = arith.constant 0 : index
    %c0_16 = arith.constant 0 : index
    %25 = vector.load %arg7[%c0_15, %c0_16] : memref<1x512xf32, #tpu.memory_space<vmem>>, vector<1x512xf32>
    %26 = vector.broadcast %25 : vector<1x512xf32> to vector<16x512xf32>
    %27 = arith.addf %24, %26 : vector<16x512xf32>
    %cst_17 = arith.constant 0.000000e+00 : f32
    %28 = vector.broadcast %cst_17 : f32 to vector<16x512xf32>
    %29 = arith.subf %28, %27 : vector<16x512xf32>
    %30 = math.exp %29 : vector<16x512xf32>
    %cst_18 = arith.constant 1.000000e+00 : f32
    %31 = vector.broadcast %cst_18 : f32 to vector<16x512xf32>
    %32 = arith.addf %31, %30 : vector<16x512xf32>
    %cst_19 = arith.constant 1.000000e+00 : f32
    %33 = vector.broadcast %cst_19 : f32 to vector<16x512xf32>
    %34 = arith.divf %33, %32 : vector<16x512xf32>
    %35 = arith.mulf %27, %34 : vector<16x512xf32>
    %36 = arith.truncf %35 : vector<16x512xf32> to vector<16x512xbf16>
    %c0_20 = arith.constant 0 : index
    %c0_21 = arith.constant 0 : index
    %37 = vector.load %arg8[%c0_20, %c0_21] : memref<512x128xbf16, #tpu.memory_space<vmem>>, vector<512x128xbf16>
    %cst_22 = arith.constant dense<0.000000e+00> : vector<16x128xf32>
    %38 = tpu.matmul %36, %37, %cst_22 {dimension_numbers = #tpu.dot_dimension_numbers<[1], [0], [0], [1], [0, 0, 1, 1], [], []>} : vector<16x512xbf16>, vector<512x128xbf16>, vector<16x128xf32> -> vector<16x128xf32>
    %39 = arith.addf %8, %38 : vector<16x128xf32>
    %c0_23 = arith.constant 0 : index
    %c0_24 = arith.constant 0 : index
    %40 = vector.load %arg9[%c0_23, %c0_24] : memref<1x128xf32, #tpu.memory_space<vmem>>, vector<1x128xf32>
    %41 = vector.broadcast %40 : vector<1x128xf32> to vector<16x128xf32>
    %42 = arith.addf %39, %41 : vector<16x128xf32>
    %c0_25 = arith.constant 0 : index
    %c0_26 = arith.constant 0 : index
    %43 = vector.load %arg10[%c0_25, %c0_26] : memref<16x128xf32, #tpu.memory_space<vmem>>, vector<16x128xf32>
    tpu.vector_store %arg10[%c0_25, %c0_26], %42 {strides = array<i32>} : memref<16x128xf32, #tpu.memory_space<vmem>>, vector<16x128xf32>,
    return
  }
  func.func @transform_0(%arg0: i32) -> (i32, i32) {
    %c0_i32 = arith.constant 0 : i32
    %c0_i32_0 = arith.constant 0 : i32
    return %arg0, %c0_i32 : i32, i32
  }
  func.func @transform_1(%arg0: i32) -> (i32, i32) {
    %c0_i32 = arith.constant 0 : i32
    %c0_i32_0 = arith.constant 0 : i32
    return %arg0, %c0_i32 : i32, i32
  }
  func.func @transform_2(%arg0: i32) -> (i32, i32) {
    %c0_i32 = arith.constant 0 : i32
    %c0_i32_0 = arith.constant 0 : i32
    %c0_i32_1 = arith.constant 0 : i32
    return %c0_i32, %c0_i32_0 : i32, i32
  }
  func.func @transform_3(%arg0: i32) -> (i32, i32) {
    %c0_i32 = arith.constant 0 : i32
    %c0_i32_0 = arith.constant 0 : i32
    %c0_i32_1 = arith.constant 0 : i32
    return %c0_i32, %c0_i32_0 : i32, i32
  }
  func.func @transform_4(%arg0: i32) -> (i32, i32) {
    %c0_i32 = arith.constant 0 : i32
    %c0_i32_0 = arith.constant 0 : i32
    %c0_i32_1 = arith.constant 0 : i32
    return %c0_i32, %c0_i32_0 : i32, i32
  }
  func.func @transform_5(%arg0: i32) -> (i32, i32) {
    %c0_i32 = arith.constant 0 : i32
    %c0_i32_0 = arith.constant 0 : i32
    %c0_i32_1 = arith.constant 0 : i32
    return %c0_i32, %c0_i32_0 : i32, i32
  }
  func.func @transform_6(%arg0: i32) -> (i32, i32) {
    %c0_i32 = arith.constant 0 : i32
    %c0_i32_0 = arith.constant 0 : i32
    %c0_i32_1 = arith.constant 0 : i32
    return %c0_i32, %c0_i32_0 : i32, i32
  }
  func.func @transform_7(%arg0: i32) -> (i32, i32) {
    %c0_i32 = arith.constant 0 : i32
    %c0_i32_0 = arith.constant 0 : i32
    %c0_i32_1 = arith.constant 0 : i32
    return %c0_i32, %c0_i32_0 : i32, i32
  }
  func.func @transform_8(%arg0: i32) -> (i32, i32) {
    %c0_i32 = arith.constant 0 : i32
    %c0_i32_0 = arith.constant 0 : i32
    %c0_i32_1 = arith.constant 0 : i32
    return %c0_i32, %c0_i32_0 : i32, i32
  }
  func.func @transform_9(%arg0: i32) -> (i32, i32) {
    %c0_i32 = arith.constant 0 : i32
    %c0_i32_0 = arith.constant 0 : i32
    return %arg0, %c0_i32 : i32, i32
  }
}

</mosaic_0001>

<bundles_post_ra>
// kernel: forward.3
= control target key start
LH: loop header
LB: loop body
LE: loop exit
PB: predicated region body
PF: predicated region fallthrough
CT: control target
= control target key end

     0   :  { %s813_s24 = smov 0   ;;  %s895_s0 = inlined_call_operand.vmem [shape: f32[32,128], index: 0, kind: input, shape index: {}]   ;;  %s896_s1 = inlined_call_operand.vmem [shape: f32[1,128], index: 1, kind: input, shape index: {}]   ;;  %s897_s2 = inlined_call_operand.vmem [shape: bf16[128,128], index: 2, kind: input, shape index: {}]   ;;  %s898_s3 = inlined_call_operand.vmem [shape: f32[1,128], index: 3, kind: input, shape index: {}]   ;;  %s899_s4 = inlined_call_operand.vmem [shape: bf16[128,64], index: 4, kind: input, shape index: {}]   ;;  %s900_s5 = inlined_call_operand.vmem [shape: f32[1,64], index: 5, kind: input, shape index: {}]   ;;  %s901_s6 = inlined_call_operand.vmem [shape: f32[32,128], index: 6, kind: output, shape index: {0}]   ;;  %s902_s7 = inlined_call_operand.vmem [shape: f32[32,64], index: 7, kind: output, shape index: {1}]  }
   0x1 LB: > { %s643_s25 = sadd.s32 4294967295, %s769_s24   ;;  %p647_p0 = scmp.ge.s32.totalorder %s769_s24, 1  ;;  %s769_s24 = sphi %s813_s24, %s18_s24  }
   0x2   : > { %p241_p1 = scmp.lt.s32.totalorder %s769_s24, 3 }
   0x4   : > { %p242_p2 = pnand %p647_p0, %p241_p1 }
   0x5   : > { %s648_s26 = sshll.u32 (!%p242_p2), %s643_s25, 1  ;;  %v771_v0 = vmov (!%p242_p2), 0.0   ;;  %v743_v1 = vld [vmem:[%s897_s2] sm:$0xff] (!%p242_p2)   ;;  %v745_v3 = vld [vmem:[%s897_s2 + $0x8] sm:$0xff] (!%p242_p2)   ;;  %v747_v9 = vld [vmem:[%s897_s2 + $0x10] sm:$0xff] (!%p242_p2)   ;;  %vm772_vm0 = vmmov (!%p242_p2), 0  }
   0x6   : > { %245 = sbr.rel (%p242_p2) target bundleno = 403 (0x193), region = 44  ;;  %p279_p3 = scmp.lt.s32.totalorder (!%p242_p2), %s648_s26, 3  ;;  %693 = vmatprep.subr.bf16.mxu0 (!%p242_p2), %v771_v0  ;;  %713 = vmatprep.subr.bf16.mxu1 (!%p242_p2), %v771_v0  ;;  %v744_v2 = vld [vmem:[%s899_s4] sm:$0xff] (!%p242_p2)   ;;  %v746_v4 = vld [vmem:[%s899_s4 + $0x8] sm:$0xff] (!%p242_p2)   ;;  %v748_v10 = vld [vmem:[%s899_s4 + $0x10] sm:$0xff] (!%p242_p2)   ;;  %vm550_vm1 = vcmask (!%p242_p2), 523264  }
   0x7   : > { %694 = vmatpush3.bf16.msra.mxu0 (!%p242_p2), %v743_v1  ;;  %714 = vmatpush3.bf16.msra.mxu1 (!%p242_p2), %v744_v2  ;;  %v749_v11 = vld [vmem:[%s897_s2 + $0x18] sm:$0xff] (!%p242_p2)   ;;  %v751_v13 = vld [vmem:[%s897_s2 + $0x20] sm:$0xff] (!%p242_p2)   ;;  %v753_v15 = vld [vmem:[%s897_s2 + $0x28] sm:$0xff] (!%p242_p2)  }
   0x8   : > { %695 = vmatprep.subr.bf16.mxu0 (!%p242_p2), %v771_v0  ;;  %715 = vmatprep.subr.bf16.mxu1 (!%p242_p2), %v771_v0  ;;  %v750_v12 = vld [vmem:[%s899_s4 + $0x18] sm:$0xff] (!%p242_p2)   ;;  %v752_v14 = vld [vmem:[%s899_s4 + $0x20] sm:$0xff] (!%p242_p2)   ;;  %v754_v16 = vld [vmem:[%s899_s4 + $0x28] sm:$0xff] (!%p242_p2)  }
   0x9   : > { %709 = vmatprep.mubr.msk.bf16.mxu0 (!%p242_p2), %vm772_vm0, %v771_v0  ;;  %729 = vmatprep.mubr.msk.bf16.mxu1 (!%p242_p2), %vm772_vm0, %v771_v0  ;;  %v755_v17 = vld [vmem:[%s897_s2 + $0x30] sm:$0xff] (!%p242_p2)   ;;  %v757_v19 = vld [vmem:[%s897_s2 + $0x38] sm:$0xff] (!%p242_p2)   ;;  %v654_v30 = vld [vmem:[%s896_s1] ss:$0 sm:$0xff] (!%p242_p2) }
   0xa   : > { %v756_v18 = vld [vmem:[%s899_s4 + $0x30] sm:$0xff] (!%p242_p2)   ;;  %v758_v20 = vld [vmem:[%s899_s4 + $0x38] sm:$0xff] (!%p242_p2)   ;;  %v655_v35 = vld [vmem:[%s898_s3] ss:$0 sm:$0xff] (!%p242_p2) }
   0xb   : > { %696 = vmatpush3.bf16.msra.mxu0 (!%p242_p2), %v745_v3  ;;  %716 = vmatpush3.bf16.msra.mxu1 (!%p242_p2), %v746_v4  ;;  %v664_v36 = vld [vmem:[%s900_s5] ss:$0 sm:$0xff] (!%p242_p2) }
   0xc   : > { %697 = vmatprep.subr.bf16.mxu0 (!%p242_p2), %v771_v0  ;;  %717 = vmatprep.subr.bf16.mxu1 (!%p242_p2), %v771_v0 }
   0xd   : > { %s904_s26 = smov (!%p279_p3, %s648_s26), 3 }
   0xe   : > { %s833_s12 = sshll.u32 %s904_s26, 3 }
   0xf   : > { %s282_s15 = scalar_lea.vmem %s895_s0, %s833_s12  ;;  %698 = vmatpush3.bf16.msra.mxu0 %v747_v9  ;;  %718 = vmatpush3.bf16.msra.mxu1 %v748_v10  ;;  %s294_s28 = scalar_lea.vmem %s902_s7, %s833_s12 }
  0x10   : > { %v297_v5 = vld [vmem:[%s282_s15] sm:$0xff]  ;;  %v298_v6 = vld [vmem:[%s282_s15 + $0x8] sm:$0xff]  ;;  %699 = vmatprep.subr.bf16.mxu0 %v771_v0  ;;  %719 = vmatprep.subr.bf16.mxu1 %v771_v0  ;;  %s288_s8 = scalar_lea.vmem %s901_s6, %s833_s12 }
  0x11   : > { %v299_v7 = vmul.f32 %v297_v5, %v297_v5  ;;  %v300_v8 = vmul.f32 %v298_v6, %v298_v6 }
  0x13   : > { %301 = vadd.xlane.f32.xlu0 %v299_v7  ;;  %700 = vmatpush3.bf16.msra.mxu0 %v749_v11 }
  0x14   : > { %720 = vmatpush3.bf16.msra.mxu1 %v750_v12  ;;  %701 = vmatprep.subr.bf16.mxu0 %v771_v0 }
  0x15   : > { %721 = vmatprep.subr.bf16.mxu1 %v771_v0 }
  0x17   : > { %303 = vadd.xlane.f32.xlu0 %v300_v8  ;;  %702 = vmatpush3.bf16.msra.mxu0 %v751_v13 }
  0x18   : > { %722 = vmatpush3.bf16.msra.mxu1 %v752_v14  ;;  %703 = vmatprep.subr.bf16.mxu0 %v771_v0 }
  0x19   : > { %723 = vmatprep.subr.bf16.mxu1 %v771_v0 }
  0x1b   : > { %704 = vmatpush3.bf16.msra.mxu0 %v753_v15 }
  0x1c   : > { %724 = vmatpush3.bf16.msra.mxu1 %v754_v16  ;;  %705 = vmatprep.subr.bf16.mxu0 %v771_v0 }
  0x1d   : > { %725 = vmatprep.subr.bf16.mxu1 %v771_v0 }
  0x1f   : > { %706 = vmatpush3.bf16.msra.mxu0 %v755_v17 }
  0x20   : > { %726 = vmatpush3.bf16.msra.mxu1 %v756_v18  ;;  %707 = vmatprep.subr.bf16.mxu0 %v771_v0 }
  0x21   : > { %727 = vmatprep.subr.bf16.mxu1 %v771_v0 }
  0x23   : > { %708 = vmatpush3.bf16.msra.mxu0 %v757_v19 }
  0x24   : > { %728 = vmatpush3.bf16.msra.mxu1 %v758_v20 }
  0xa0   : > { %v302_v21 = vpop.xlane.xlu0 %301 }
  0xa1   : > { %v306_v22 = vmul.f32 0.0078125, %v302_v21 }
  0xa3   : > { %v308_v23 = vadd.f32 1.1920929e-07, %v306_v22 }
  0xa4   : > { %v304_v24 = vpop.xlane.xlu0 %303 }
  0xa5   : > { %759 = vrsqrt.f32 %v308_v23  ;;  %v307_v25 = vmul.f32 0.0078125, %v304_v24 }
  0xa7   : > { %v309_v26 = vadd.f32 1.1920929e-07, %v307_v25 }
  0xa9   : > { %761 = vrsqrt.f32 %v309_v26 }
  0xaf   : > { %v760_v27 = vpop.eup %759 }
  0xb0   : > { %v312_v28 = vmul.f32 %v760_v27, %v297_v5 }
  0xb2   : > { %v321_v32 = vmul.f32 %v654_v30, %v312_v28 }
  0xb3   : > { %v762_v29 = vpop.eup %761 }
  0xb4   : > { %v313_v31 = vmul.f32 %v762_v29, %v298_v6 }
  0xb6   : > { %v322_v33 = vmul.f32 %v654_v30, %v313_v31 }
  0xb8   : > { %v323_v34 = vpack.c.bf16 %v322_v33, %v321_v32 }
  0xba   : > { %710 = vmatmul.mubr.bf16.vlgmr.msra.gmra.mrb[0].mxu0 %v323_v34  ;;  %730 = vmatmul.mubr.bf16.vlgmr.msra.gmra.mrb[0].mxu1 %v323_v34 }
 0x18d   : > { %v429_v37 = vpop.f32.mrb[0].mxu0  ;;  %v543_v38 = vpop.f32.mrb[0].mxu1 }
 0x18e   : > { %v430_v39 = vadd.f32 %v655_v35, %v429_v37  ;;  %v544_v40 = vadd.f32 %v664_v36, %v543_v38  ;;  %v711_v41 = vpop.f32.mrb[1].mxu0  ;;  %v731_v42 = vpop.f32.mrb[1].mxu1 }
 0x18f   : > { %v432_v43 = vpop.f32.mrb[2].mxu0  ;;  %v546_v44 = vpop.f32.mrb[2].mxu1 }
 0x190   : > { %436 = vst [vmem:[%s288_s8] sm:$0xff] %v430_v39  ;;  %551 = vst.msk [vmem:[%s294_s28] sm:$0xff] %vm550_vm1, %v544_v40  ;;  %v433_v45 = vadd.f32 %v655_v35, %v432_v43  ;;  %v547_v46 = vadd.f32 %v664_v36, %v546_v44  ;;  %v712_v47 = vpop.f32.mrb[3].mxu0  ;;  %v732_v48 = vpop.f32.mrb[3].mxu1 }
 0x192   : > { %437 = vst [vmem:[%s288_s8 + $0x8] sm:$0xff] %v433_v45  ;;  %552 = vst.msk [vmem:[%s294_s28 + $0x8] sm:$0xff] %vm550_vm1, %v547_v46 }
 0x193 PF: > { %s18_s24 = sadd.s32 1, %s769_s24  }
 0x194   : > { %p15_p4 = scmp.ge.s32.totalorder %s18_s24, 4  }
 0x196   :  { %17 = sbr.rel (!%p15_p4) target bundleno = 1 (0x1), region = 86 }

// kernel: forward.4
= control target key start
LH: loop header
LB: loop body
LE: loop exit
PB: predicated region body
PF: predicated region fallthrough
CT: control target
= control target key end

     0   :  { %s1946_s27 = smov 0   ;;  %s2955_s0 = inlined_call_operand.vmem [shape: f32[2,64,8], index: 0, kind: input, shape index: {}]   ;;  %s2956_s1 = inlined_call_operand.vmem [shape: f32[2,64,8], index: 1, kind: input, shape index: {}]   ;;  %s2957_s2 = inlined_call_operand.vmem [shape: f32[2,16,8], index: 2, kind: input, shape index: {}]   ;;  %s2958_s3 = inlined_call_operand.vmem [shape: f32[2,16,8], index: 3, kind: input, shape index: {}]   ;;  %s2959_s4 = inlined_call_operand.vmem [shape: f32[2,64,16], index: 4, kind: input, shape index: {}]   ;;  %s2960_s5 = inlined_call_operand.vmem [shape: f32[4,64,16], index: 5, kind: input, shape index: {}]   ;;  %s2961_s6 = inlined_call_operand.vmem [shape: f32[4,16,16], index: 6, kind: input, shape index: {}]   ;;  %s2962_s7 = inlined_call_operand.vmem [shape: f32[4,16,16], index: 7, kind: input, shape index: {}]   ;;  %s2963_s8 = inlined_call_operand.vmem [shape: f32[4,64,16], index: 8, kind: output, shape index: {}]  }
   0x1 LB: > { %s1676_s28 = sadd.s32 4294967295, %s1897_s27   ;;  %p1680_p0 = scmp.ge.s32.totalorder %s1897_s27, 1  ;;  %s1897_s27 = sphi %s1946_s27, %s18_s27  }
   0x2   : > { %p288_p1 = scmp.lt.s32.totalorder %s1897_s27, 3 }
   0x4   : > { %p289_p2 = pnand %p1680_p0, %p288_p1 }
   0x6   : > { %292 = sbr.rel (%p289_p2) target bundleno = 1168 (0x490), region = 52 }
   0xd   : > { %s1681_s29 = sshll.u32 %s1676_s28, 1  ;;  %vm397_vm0 = vcmask 130048   ;;  %v2089_v60 = vld [vmem:[%s2958_s3 + $0x8] sm:$0xff]  ;;  %s1899_s18 = smov 8   ;;  %v2096_v61 = vld [vmem:[%s2958_s3 + $0x10] sm:$0xff]  ;;  %v2101_v62 = vld [vmem:[%s2958_s3] sm:$0xff] }
   0xe   : > { %p337_p3 = scmp.lt.s32.totalorder %s1681_s29, 3  ;;  %v2110_v63 = vld [vmem:[%s2958_s3 + $0x18] sm:$0xff]  ;;  %s1900_s19 = smov 120   ;;  %vm895_vm1 = vcmask 64512  }
  0x10   : > { %s3021_s29 = smov (!%p337_p3, %s1681_s29), 3 }
  0x11   : > { %s1712_s30 = sshll.u32 %s3021_s29, 4  ;;  %s1711_s9 = sshll.u32 %s3021_s29, 6 }
  0x12   : > { %s348_s12 = scalar_lea.vmem %s2961_s6, %s1712_s30  ;;  %s1970_s15 = scalar_lea.vmem %s2960_s5, %s1711_s9 }
  0x13   : > { %v1963_v0 = vld [vmem:[%s348_s12 + $0x10] sm:$0xff]  ;;  %v1972_v1 = vld [vmem:[%s348_s12] sm:$0xff]  ;;  %v1974_v2 = vld [vmem:[%s348_s12 + $0x18] sm:$0xff]  ;;  %s355_s10 = scalar_lea.vmem %s2962_s7, %s1712_s30 }
  0x14   : > { %v918_v3 = vmul.f32 %v1963_v0, %v1963_v0  ;;  %v916_v4 = vmul.f32 %v1972_v1, %v1972_v1  ;;  %v919_v5 = vmul.f32 %v1974_v2, %v1974_v2  ;;  %v1982_v6 = vld [vmem:[%s348_s12 + $0x8] sm:$0xff]  ;;  %v1990_v9 = vld [vmem:[%s1970_s15] sm:$0xff]  ;;  %v2001_v16 = vld [vmem:[%s1970_s15 + $0x18] sm:$0xff] }
  0x15   : > { %v917_v7 = vmul.f32 %v1982_v6, %v1982_v6  ;;  %v1987_v8 = vld [vmem:[%s1970_s15 + $0x8] sm:$0xff]  ;;  %v381_v15 = vmul.f32 %v1990_v9, %v1990_v9  ;;  %v2004_v17 = vld [vmem:[%s1970_s15 + $0x10] sm:$0xff]  ;;  %v384_v20 = vmul.f32 %v2001_v16, %v2001_v16  ;;  %v2016_v23 = vld [vmem:[%s1970_s15 + $0x40] sm:$0xff] }
  0x16   : > { %v926_v10 = vsel %vm397_vm0, %v918_v3, 0.0  ;;  %v920_v11 = vsel %vm397_vm0, %v916_v4, 0.0  ;;  %v929_v12 = vsel %vm397_vm0, %v919_v5, 0.0  ;;  %v382_v14 = vmul.f32 %v1987_v8, %v1987_v8  ;;  %v2013_v22 = vld [vmem:[%s1970_s15 + $0x48] sm:$0xff]  ;;  %v2025_v28 = vld [vmem:[%s1970_s15 + $0x58] sm:$0xff]  ;;  %v2028_v29 = vld [vmem:[%s1970_s15 + $0x50] sm:$0xff] }
  0x17   : > { %927 = vadd.xlane.f32.xlu1 %v926_v10  ;;  %921 = vadd.xlane.f32.xlu0 %v920_v11  ;;  %v923_v13 = vsel %vm397_vm0, %v917_v7, 0.0  ;;  %v398_v19 = vsel %vm397_vm0, %v381_v15, 0.0  ;;  %v383_v21 = vmul.f32 %v2004_v17, %v2004_v17  ;;  %v407_v24 = vsel %vm397_vm0, %v384_v20, 0.0  ;;  %v2037_v34 = vld [vmem:[%s1970_s15 + $0x28] sm:$0xff]  ;;  %v2040_v35 = vld [vmem:[%s1970_s15 + $0x20] sm:$0xff]  ;;  %v2049_v40 = vld [vmem:[%s1970_s15 + $0x38] sm:$0xff] }
  0x18   : > { %v401_v18 = vsel %vm397_vm0, %v382_v14, 0.0  ;;  %v390_v26 = vmul.f32 %v2013_v22, %v2013_v22  ;;  %v389_v27 = vmul.f32 %v2016_v23, %v2016_v23  ;;  %v392_v32 = vmul.f32 %v2025_v28, %v2025_v28  ;;  %v2052_v41 = vld [vmem:[%s1970_s15 + $0x30] sm:$0xff]  ;;  %v2061_v46 = vld [vmem:[%s1970_s15 + $0x68] sm:$0xff]  ;;  %v2064_v47 = vld [vmem:[%s1970_s15 + $0x60] sm:$0xff] }
  0x19   : > { %v404_v25 = vsel %vm397_vm0, %v383_v21, 0.0  ;;  %v391_v33 = vmul.f32 %v2028_v29, %v2028_v29  ;;  %v386_v38 = vmul.f32 %v2037_v34, %v2037_v34  ;;  %v385_v39 = vmul.f32 %v2040_v35, %v2040_v35  ;;  %v2073_v52 = vld [vmem:[%s1970_s15 + $0x78] sm:$0xff]  ;;  %v2076_v53 = vld [vmem:[%s1970_s15 + $0x70] sm:$0xff]  ;;  %v2115_v3 = vld [vmem:[%s2956_s1] sm:$0xff] }
  0x1a   : > { %v425_v30 = vsel %vm397_vm0, %v390_v26, 0.0  ;;  %v422_v31 = vsel %vm397_vm0, %v389_v27, 0.0  ;;  %v431_v36 = vsel %vm397_vm0, %v392_v32, 0.0  ;;  %v388_v44 = vmul.f32 %v2049_v40, %v2049_v40  ;;  %2982 = vst [vmem:[#allocation2_spill] sm:$0xff] %v2073_v52  ;;  %v2124_v4 = vld [vmem:[%s2956_s1 + $0x8] sm:$0xff]  ;;  %v2129_v5 = vld [vmem:[%s2956_s1 + $0x10] sm:$0xff] }
  0x1b   : > { %930 = vadd.xlane.f32.xlu1 %v929_v12  ;;  %924 = vadd.xlane.f32.xlu0 %v923_v13  ;;  %v428_v37 = vsel %vm397_vm0, %v391_v33, 0.0  ;;  %v413_v42 = vsel %vm397_vm0, %v386_v38, 0.0  ;;  %v410_v43 = vsel %vm397_vm0, %v385_v39, 0.0  ;;  %v387_v45 = vmul.f32 %v2052_v41, %v2052_v41  ;;  %v2138_v7 = vld [vmem:[%s2956_s1 + $0x18] sm:$0xff]  ;;  %v2143_v10 = vld [vmem:[%s2956_s1 + $0x40] sm:$0xff]  ;;  %v2152_v11 = vld [vmem:[%s2956_s1 + $0x48] sm:$0xff] }
  0x1c   : > { %v419_v48 = vsel %vm397_vm0, %v388_v44, 0.0  ;;  %v394_v50 = vmul.f32 %v2061_v46, %v2061_v46  ;;  %v393_v51 = vmul.f32 %v2064_v47, %v2064_v47  ;;  %v396_v56 = vmul.f32 %v2073_v52, %v2073_v52  ;;  %v2157_v12 = vld [vmem:[%s2956_s1 + $0x50] sm:$0xff]  ;;  %v2166_v13 = vld [vmem:[%s2956_s1 + $0x58] sm:$0xff]  ;;  %v2171_v14 = vld [vmem:[%s2956_s1 + $0x20] sm:$0xff] }
  0x1d   : > { %v416_v49 = vsel %vm397_vm0, %v387_v45, 0.0  ;;  %v395_v57 = vmul.f32 %v2076_v53, %v2076_v53  ;;  %v2180_v15 = vld [vmem:[%s2956_s1 + $0x28] sm:$0xff]  ;;  %v2199_v20 = vld [vmem:[%s2956_s1 + $0x60] sm:$0xff] }
  0x1e   : > { %v437_v54 = vsel %vm397_vm0, %v394_v50, 0.0  ;;  %v434_v55 = vsel %vm397_vm0, %v393_v51, 0.0  ;;  %v443_v58 = vsel %vm397_vm0, %v396_v56, 0.0  ;;  %v2208_v21 = vld [vmem:[%s2956_s1 + $0x68] sm:$0xff]  ;;  %v2227_v26 = vld [vmem:[%s2957_s2] sm:$0xff] }
  0x1f   : > { %402 = vadd.xlane.f32.xlu1 %v401_v18  ;;  %399 = vadd.xlane.f32.xlu0 %v398_v19  ;;  %v440_v59 = vsel %vm397_vm0, %v395_v57, 0.0  ;;  %v2185_v18 = vld [vmem:[%s2956_s1 + $0x30] sm:$0xff]  ;;  %v2194_v19 = vld [vmem:[%s2956_s1 + $0x38] sm:$0xff]  ;;  %2983 = vst [vmem:[#allocation3_spill] sm:$0xff] %v2208_v21  ;;  %2986 = vst [vmem:[#allocation6_spill] sm:$0xff] %v2227_v26 }
  0x20   : > { %v2236_v27 = vld [vmem:[%s2957_s2 + $0x8] sm:$0xff]  ;;  %v2252_v32 = vld [vmem:[%s2955_s0] sm:$0xff] }
  0x21   : > { %2987 = vst [vmem:[#allocation7_spill] sm:$0xff] %v2236_v27  ;;  %2989 = vst [vmem:[#allocation9_spill] sm:$0xff] %v2252_v32  ;;  %v2261_v33 = vld [vmem:[%s2955_s0 + $0x8] sm:$0xff]  ;;  %v2280_v38 = vld [vmem:[%s2955_s0 + $0x40] sm:$0xff] }
  0x22   : > { %2990 = vst [vmem:[#allocation10_spill] sm:$0xff] %v2261_v33  ;;  %2993 = vst [vmem:[#allocation13_spill] sm:$0xff] %v2280_v38  ;;  %v2289_v39 = vld [vmem:[%s2955_s0 + $0x48] sm:$0xff]  ;;  %v2308_v44 = vld [vmem:[%s2955_s0 + $0x20] sm:$0xff] }
  0x23   : > { %408 = vadd.xlane.f32.xlu1 %v407_v24  ;;  %405 = vadd.xlane.f32.xlu0 %v404_v25  ;;  %v2213_v24 = vld [vmem:[%s2956_s1 + $0x70] sm:$0xff]  ;;  %v2222_v25 = vld [vmem:[%s2956_s1 + $0x78] sm:$0xff]  ;;  %2994 = vst [vmem:[#allocation14_spill] sm:$0xff] %v2289_v39  ;;  %2997 = vst [vmem:[#allocation17_spill] sm:$0xff] %v2308_v44 }
  0x24   : > { %2984 = vst [vmem:[#allocation4_spill] sm:$0xff] %v2213_v24  ;;  %2985 = vst [vmem:[#allocation5_spill] sm:$0xff] %v2222_v25  ;;  %v2317_v45 = vld [vmem:[%s2955_s0 + $0x28] sm:$0xff] }
  0x25   : > { %2998 = vst [vmem:[#allocation18_spill] sm:$0xff] %v2317_v45 }
  0x27   : > { %426 = vadd.xlane.f32.xlu1 %v425_v30  ;;  %423 = vadd.xlane.f32.xlu0 %v422_v31  ;;  %v950_v30 = vld [vmem:[%s2957_s2 + $0x10] sm:$0xff]  ;;  %v2247_v31 = vld [vmem:[%s2957_s2 + $0x18] sm:$0xff] }
  0x28   : > { %2988 = vst [vmem:[#allocation8_spill] sm:$0xff] %v2247_v31 }
  0x2b   : > { %432 = vadd.xlane.f32.xlu1 %v431_v36  ;;  %429 = vadd.xlane.f32.xlu0 %v428_v37  ;;  %v2266_v36 = vld [vmem:[%s2955_s0 + $0x10] sm:$0xff]  ;;  %v2275_v37 = vld [vmem:[%s2955_s0 + $0x18] sm:$0xff] }
  0x2c   : > { %2991 = vst [vmem:[#allocation11_spill] sm:$0xff] %v2266_v36  ;;  %2992 = vst [vmem:[#allocation12_spill] sm:$0xff] %v2275_v37 }
  0x2f   : > { %414 = vadd.xlane.f32.xlu1 %v413_v42  ;;  %411 = vadd.xlane.f32.xlu0 %v410_v43  ;;  %v2294_v42 = vld [vmem:[%s2955_s0 + $0x50] sm:$0xff]  ;;  %v2303_v43 = vld [vmem:[%s2955_s0 + $0x58] sm:$0xff] }
  0x30   : > { %2995 = vst [vmem:[#allocation15_spill] sm:$0xff] %v2294_v42  ;;  %2996 = vst [vmem:[#allocation16_spill] sm:$0xff] %v2303_v43 }
  0x33   : > { %420 = vadd.xlane.f32.xlu1 %v419_v48  ;;  %417 = vadd.xlane.f32.xlu0 %v416_v49  ;;  %v2322_v48 = vld [vmem:[%s2955_s0 + $0x30] sm:$0xff] }
  0x34   : > { %2999 = vst [vmem:[#allocation19_spill] sm:$0xff] %v2322_v48 }
  0x37   : > { %438 = vadd.xlane.f32.xlu1 %v437_v54  ;;  %435 = vadd.xlane.f32.xlu0 %v434_v55 }
  0x3b   : > { %444 = vadd.xlane.f32.xlu1 %v443_v58  ;;  %441 = vadd.xlane.f32.xlu0 %v440_v59 }
  0x4c   : > { %966 = vrot.lane.b32.xlu1 %v2089_v60, %s1899_s18 }
  0x50   : > { %968 = vrot.lane.b32.xlu1 %v2096_v61, %s1899_s18 }
  0x51   : > { %964 = vrot.lane.b32.xlu0 %v2101_v62, %s1899_s18 }
  0x54   : > { %970 = vrot.lane.b32.xlu1 %v2110_v63, %s1899_s18 }
  0x55   : > { %575 = vrot.lane.b32.xlu0 %v2115_v3, %s1899_s18 }
  0x58   : > { %577 = vrot.lane.b32.xlu1 %v2124_v4, %s1899_s18 }
  0x59   : > { %579 = vrot.lane.b32.xlu0 %v2129_v5, %s1899_s18 }
  0x5c   : > { %581 = vrot.lane.b32.xlu1 %v2138_v7, %s1899_s18 }
  0x5d   : > { %591 = vrot.lane.b32.xlu0 %v2143_v10, %s1899_s18 }
  0x60   : > { %593 = vrot.lane.b32.xlu1 %v2152_v11, %s1899_s18 }
  0x61   : > { %595 = vrot.lane.b32.xlu0 %v2157_v12, %s1899_s18 }
  0x64   : > { %597 = vrot.lane.b32.xlu1 %v2166_v13, %s1899_s18 }
  0x65   : > { %583 = vrot.lane.b32.xlu0 %v2171_v14, %s1899_s18 }
  0x68   : > { %585 = vrot.lane.b32.xlu1 %v2180_v15, %s1899_s18 }
  0x69   : > { %587 = vrot.lane.b32.xlu0 %v2185_v18, %s1899_s18 }
  0x6c   : > { %589 = vrot.lane.b32.xlu1 %v2194_v19, %s1899_s18 }
  0x6d   : > { %599 = vrot.lane.b32.xlu0 %v2199_v20, %s1899_s18 }
  0x70   : > { %601 = vrot.lane.b32.xlu1 %v2208_v21, %s1899_s18 }
  0x71   : > { %603 = vrot.lane.b32.xlu0 %v2213_v24, %s1899_s18 }
  0x74   : > { %605 = vrot.lane.b32.xlu1 %v2222_v25, %s1899_s18 }
  0x75   : > { %1004 = vrot.lane.b32.xlu0 %v2227_v26, %s1899_s18 }
  0x78   : > { %1006 = vrot.lane.b32.xlu1 %v2236_v27, %s1899_s18 }
  0x79   : > { %1008 = vrot.lane.b32.xlu0 %v950_v30, %s1899_s18 }
  0x7c   : > { %1010 = vrot.lane.b32.xlu1 %v2247_v31, %s1899_s18 }
  0x7d   : > { %735 = vrot.lane.b32.xlu0 %v2252_v32, %s1899_s18 }
  0x80   : > { %737 = vrot.lane.b32.xlu1 %v2261_v33, %s1899_s18 }
  0x81   : > { %739 = vrot.lane.b32.xlu0 %v2266_v36, %s1899_s18 }
  0x84   : > { %741 = vrot.lane.b32.xlu1 %v2275_v37, %s1899_s18 }
  0x85   : > { %751 = vrot.lane.b32.xlu0 %v2280_v38, %s1899_s18 }
  0x88   : > { %753 = vrot.lane.b32.xlu1 %v2289_v39, %s1899_s18 }
  0x89   : > { %755 = vrot.lane.b32.xlu0 %v2294_v42, %s1899_s18 }
  0x8c   : > { %757 = vrot.lane.b32.xlu1 %v2303_v43, %s1899_s18 }
  0x8d   : > { %743 = vrot.lane.b32.xlu0 %v2308_v44, %s1899_s18 }
  0x90   : > { %745 = vrot.lane.b32.xlu1 %v2317_v45, %s1899_s18 }
  0x91   : > { %747 = vrot.lane.b32.xlu0 %v2322_v48, %s1899_s18 }
  0xa4   : > { %v928_v49 = vpop.xlane.xlu1 %927  ;;  %v922_v50 = vpop.xlane.xlu0 %921 }
  0xa5   : > { %v934_v51 = vmul.f32 0.0625, %v928_v49  ;;  %v932_v45 = vmul.f32 0.0625, %v922_v50 }
  0xa7   : > { %v938_v54 = vadd.f32 1.1920929e-07, %v934_v51 }
  0xa8   : > { %v931_v55 = vpop.xlane.xlu1 %930  ;;  %v925_v56 = vpop.xlane.xlu0 %924 }
  0xa9   : > { %1787 = vrsqrt.f32 %v938_v54  ;;  %v933_v36 = vmul.f32 0.0625, %v925_v56  ;;  %v936_v54 = vadd.f32 1.1920929e-07, %v932_v45  ;;  %v935_v31 = vmul.f32 0.0625, %v931_v55 }
  0xab   : > { %v937_v37 = vadd.f32 1.1920929e-07, %v933_v36  ;;  %1789 = vrsqrt.f32 %v936_v54  ;;  %v939_v50 = vadd.f32 1.1920929e-07, %v935_v31 }
  0xac   : > { %v403_v57 = vpop.xlane.xlu1 %402  ;;  %v400_v58 = vpop.xlane.xlu0 %399 }
  0xad   : > { %1791 = vrsqrt.f32 %v937_v37  ;;  %v447_v45 = vmul.f32 0.0625, %v400_v58 }
  0xae   : > { %1793 = vrsqrt.f32 %v939_v50 }
  0xaf   : > { %v463_v37 = vadd.f32 1.1920929e-07, %v447_v45 }
  0xb0   : > { %v409_v59 = vpop.xlane.xlu1 %408  ;;  %v406_v44 = vpop.xlane.xlu0 %405 }
  0xb1   : > { %v449_v21 = vmul.f32 0.0625, %v406_v44 }
  0xb3   : > { %v1788_v42 = vpop.eup %1787 }
  0xb4   : > { %v427_v43 = vpop.xlane.xlu1 %426  ;;  %v424_v38 = vpop.xlane.xlu0 %423  ;;  %v2329_v39 = vmul.f32 %v1788_v42, %v1963_v0 }
  0xb5   : > { %v1790_v36 = vpop.eup %1789  ;;  %v456_v45 = vmul.f32 0.0625, %v427_v43 }
  0xb6   : > { %v2332_v48 = vmul.f32 %v950_v30, %v2329_v39  ;;  %v2358_v31 = vmul.f32 %v1790_v36, %v1972_v1 }
  0xb7   : > { %v1792_v26 = vpop.eup %1791 }
  0xb8   : > { %3000 = vst [vmem:[#allocation20_spill] sm:$0xff] %v2332_v48  ;;  %v2334_v49 = vpop.xlane.xlu1 %432  ;;  %v2336_v51 = vpop.xlane.xlu0 %429  ;;  %v448_v48 = vmul.f32 0.0625, %v403_v57  ;;  %v2355_v54 = vmul.f32 %v1792_v26, %v1982_v6  ;;  %v450_v57 = vmul.f32 0.0625, %v409_v59  ;;  %v465_v59 = vadd.f32 1.1920929e-07, %v449_v21 }
  0xb9   : > { %v1794_v6 = vpop.eup %1793 }
  0xba   : > { %v464_v55 = vadd.f32 1.1920929e-07, %v448_v48  ;;  %v466_v1 = vadd.f32 1.1920929e-07, %v450_v57  ;;  %v1021_v36 = vmul.f32 %v2089_v60, %v2355_v54  ;;  %v2371_v44 = vmul.f32 %v1794_v6, %v1974_v2 }
  0xbb   : > { %v472_v57 = vadd.f32 1.1920929e-07, %v456_v45 }
  0xbc   : > { %v2338_v32 = vpop.xlane.xlu1 %414  ;;  %v2340_v33 = vpop.xlane.xlu0 %411  ;;  %1795 = vrsqrt.f32 %v464_v55  ;;  %v1023_v2 = vmul.f32 %v2110_v63, %v2371_v44 }
  0xbd   : > { %1797 = vrsqrt.f32 %v463_v37 }
  0xbe   : > { %1799 = vrsqrt.f32 %v466_v1 }
  0xbf   : > { %1801 = vrsqrt.f32 %v465_v59 }
  0xc0   : > { %v2342_v0 = vpop.xlane.xlu1 %420  ;;  %v2344_v42 = vpop.xlane.xlu0 %417  ;;  %1803 = vrsqrt.f32 %v472_v57 }
  0xc4   : > { %v2346_v30 = vpop.xlane.xlu1 %438  ;;  %v2348_v56 = vpop.xlane.xlu0 %435 }
  0xc8   : > { %v2350_v27 = vpop.xlane.xlu1 %444  ;;  %v2352_v25 = vpop.xlane.xlu0 %441 }
  0xcc   : > { %v967_v24 = vpop.permute.xlu1 %966  ;;  %v965_v52 = vpop.permute.xlu0 %964 }
  0xcd   : > { %v977_v58 = vmul.f32 %v967_v24, %v2355_v54  ;;  %v976_v50 = vmul.f32 %v965_v52, %v2358_v31  ;;  %v1020_v24 = vmul.f32 %v2101_v62, %v2358_v31  ;;  %v455_v52 = vmul.f32 0.0625, %v424_v38  ;;  %v1796_v62 = vpop.eup %1795 }
  0xce   : > { %v1798_v21 = vpop.eup %1797  ;;  %v2385_v1 = vmul.f32 %v1796_v62, %v1987_v8 }
  0xcf   : > { %986 = vrot.lane.b32.xlu1 %v977_v58, %s1900_s19  ;;  %984 = vrot.lane.b32.xlu0 %v976_v50, %s1900_s19  ;;  %v471_v58 = vadd.f32 1.1920929e-07, %v455_v52  ;;  %v1022_v50 = vmul.f32 %v2096_v61, %v2329_v39  ;;  %v457_v61 = vmul.f32 0.0625, %v2336_v51  ;;  %v1800_v59 = vpop.eup %1799 }
  0xd0   : > { %v969_v26 = vpop.permute.xlu1 %968  ;;  %v576_v48 = vpop.permute.xlu0 %575  ;;  %v800_v57 = vmul.f32 %v2124_v4, %v2385_v1 }
  0xd1   : > { %v978_v43 = vmul.f32 %v969_v26, %v2329_v39  ;;  %1805 = vrsqrt.f32 %v471_v58  ;;  %v2382_v26 = vmul.f32 %v1798_v21, %v1990_v9  ;;  %v1802_v8 = vpop.eup %1801 }
  0xd2   : > { %v2402_v51 = vmul.f32 %v1802_v8, %v2004_v17 }
  0xd3   : > { %1030 = vrot.lane.b32.xlu1 %v1021_v36, %s1899_s18  ;;  %1028 = vrot.lane.b32.xlu0 %v1020_v24, %s1899_s18  ;;  %v458_v36 = vmul.f32 0.0625, %v2334_v49  ;;  %v623_v63 = vmul.f32 %v576_v48, %v2382_v26  ;;  %v799_v49 = vmul.f32 %v2115_v3, %v2382_v26  ;;  %v473_v48 = vadd.f32 1.1920929e-07, %v457_v61 }
  0xd4   : > { %v971_v55 = vpop.permute.xlu1 %970  ;;  %v580_v37 = vpop.permute.xlu0 %579 }
  0xd5   : > { %v979_v60 = vmul.f32 %v971_v55, %v2371_v44  ;;  %v474_v55 = vadd.f32 1.1920929e-07, %v458_v36  ;;  %v625_v4 = vmul.f32 %v580_v37, %v2402_v51  ;;  %v801_v36 = vmul.f32 %v2129_v5, %v2402_v51 }
  0xd7   : > { %990 = vrot.lane.b32.xlu1 %v979_v60, %s1900_s19  ;;  %988 = vrot.lane.b32.xlu0 %v978_v43, %s1900_s19  ;;  %v1804_v43 = vpop.eup %1803  ;;  %v2405_v60 = vmul.f32 %v1800_v59, %v2001_v16  ;;  %1807 = vrsqrt.f32 %v474_v55 }
  0xd8   : > { %v592_v38 = vpop.permute.xlu0 %591  ;;  %v578_v6 = vpop.permute.xlu1 %577  ;;  %1809 = vrsqrt.f32 %v473_v48  ;;  %v2417_v16 = vmul.f32 %v1804_v43, %v2013_v22  ;;  %v459_v43 = vmul.f32 0.0625, %v2348_v56 }
  0xd9   : > { %v624_v24 = vmul.f32 %v578_v6, %v2385_v1  ;;  %v451_v6 = vmul.f32 0.0625, %v2340_v33  ;;  %v802_v22 = vmul.f32 %v2138_v7, %v2405_v60 }
  0xda   : > { %v808_v59 = vmul.f32 %v2152_v11, %v2417_v16 }
  0xdb   : > { %1034 = vrot.lane.b32.xlu1 %v1023_v2, %s1899_s18  ;;  %1032 = vrot.lane.b32.xlu0 %v1022_v50, %s1899_s18  ;;  %v1806_v58 = vpop.eup %1805 }
  0xdc   : > { %v596_v45 = vpop.permute.xlu0 %595  ;;  %v582_v9 = vpop.permute.xlu1 %581  ;;  %v2414_v17 = vmul.f32 %v1806_v58, %v2016_v23 }
  0xdd   : > { %v626_v3 = vmul.f32 %v582_v9, %v2405_v60 }
  0xde   : > { %v631_v50 = vmul.f32 %v592_v38, %v2414_v17  ;;  %v807_v7 = vmul.f32 %v2143_v10, %v2414_v17  ;;  %v453_v10 = vmul.f32 0.0625, %v2344_v42 }
  0xdf   : > { %657 = vrot.lane.b32.xlu1 %v624_v24, %s1900_s19  ;;  %655 = vrot.lane.b32.xlu0 %v623_v63, %s1900_s19  ;;  %v452_v63 = vmul.f32 0.0625, %v2338_v32  ;;  %v467_v24 = vadd.f32 1.1920929e-07, %v451_v6 }
  0xe0   : > { %v2395_v52 = vpop.permute.xlu0 %583  ;;  %v594_v21 = vpop.permute.xlu1 %593 }
  0xe1   : > { %v632_v37 = vmul.f32 %v594_v21, %v2417_v16  ;;  %v1808_v38 = vpop.eup %1807  ;;  %v468_v8 = vadd.f32 1.1920929e-07, %v452_v63  ;;  %1811 = vrsqrt.f32 %v467_v24  ;;  %v461_v63 = vmul.f32 0.0625, %v2352_v25  ;;  %v2510_v24 = vld [vmem:[%s2955_s0 + $0x70] sm:$0xff] }
  0xe2   : > { %v1810_v33 = vpop.eup %1809  ;;  %v2447_v9 = vmul.f32 %v1808_v38, %v2025_v28  ;;  %v454_v28 = vmul.f32 0.0625, %v2342_v0  ;;  %v460_v0 = vmul.f32 0.0625, %v2346_v30  ;;  %v462_v25 = vmul.f32 0.0625, %v2350_v27 }
  0xe3   : > { %833 = vrot.lane.b32.xlu1 %v800_v57, %s1899_s18  ;;  %831 = vrot.lane.b32.xlu0 %v799_v49, %s1899_s18  ;;  %v2444_v32 = vmul.f32 %v1810_v33, %v2028_v29  ;;  %1813 = vrsqrt.f32 %v468_v8  ;;  %v477_v8 = vadd.f32 1.1920929e-07, %v461_v63  ;;  %v3002_v63 = vld [vmem:[#allocation2_spill] sm:$0xff] }
  0xe4   : > { %v2409_v62 = vpop.permute.xlu0 %587  ;;  %v598_v5 = vpop.permute.xlu1 %597  ;;  %v810_v49 = vmul.f32 %v2166_v13, %v2447_v9  ;;  %v2474_v13 = vld [vmem:[%s2955_s0 + $0x38] sm:$0xff]  ;;  %v476_v6 = vadd.f32 1.1920929e-07, %v460_v0 }
  0xe5   : > { %v633_v11 = vmul.f32 %v596_v45, %v2444_v32  ;;  %v634_v57 = vmul.f32 %v598_v5, %v2447_v9  ;;  %v809_v48 = vmul.f32 %v2157_v12, %v2444_v32  ;;  %v469_v45 = vadd.f32 1.1920929e-07, %v453_v10  ;;  %v2479_v12 = vld [vmem:[%s2955_s0 + $0x60] sm:$0xff]  ;;  %v2524_v5 = vld [vmem:[%s2955_s0 + $0x78] sm:$0xff] }
  0xe7   : > { %661 = vrot.lane.b32.xlu1 %v626_v3, %s1900_s19  ;;  %659 = vrot.lane.b32.xlu0 %v625_v4, %s1900_s19  ;;  %v470_v4 = vadd.f32 1.1920929e-07, %v454_v28  ;;  %1815 = vrsqrt.f32 %v469_v45  ;;  %v475_v3 = vadd.f32 1.1920929e-07, %v459_v43  ;;  %v478_v45 = vadd.f32 1.1920929e-07, %v462_v25 }
  0xe8   : > { %v2421_v2 = vpop.permute.xlu0 %599 }
  0xe9   : > { %1817 = vrsqrt.f32 %v470_v4 }
  0xea   : > { %1819 = vrsqrt.f32 %v475_v3 }
  0xeb   : > { %673 = vrot.lane.b32.xlu1 %v632_v37, %s1900_s19  ;;  %671 = vrot.lane.b32.xlu0 %v631_v50, %s1900_s19  ;;  %v1812_v42 = vpop.eup %1811  ;;  %v586_v37 = vpop.permute.xlu1 %585  ;;  %1821 = vrsqrt.f32 %v476_v6  ;;  %v3001_v6 = vld [vmem:[#allocation3_spill] sm:$0xff] }
  0xec   : > { %v2428_v23 = vpop.permute.xlu0 %603  ;;  %v2482_v56 = vmul.f32 %v1812_v42, %v2040_v35  ;;  %v2495_v35 = vld [vmem:[%s2955_s0 + $0x68] sm:$0xff]  ;;  %1823 = vrsqrt.f32 %v477_v8 }
  0xed   : > { %v1814_v30 = vpop.eup %1813  ;;  %1825 = vrsqrt.f32 %v478_v45  ;;  %v3005_v45 = vld [vmem:[#allocation7_spill] sm:$0xff] }
  0xee   : > { %v627_v50 = vmul.f32 %v2395_v52, %v2482_v56 }
  0xef   : > { %837 = vrot.lane.b32.xlu1 %v802_v22, %s1899_s18  ;;  %835 = vrot.lane.b32.xlu0 %v801_v36, %s1899_s18  ;;  %v2498_v22 = vmul.f32 %v1814_v30, %v2037_v34  ;;  %v590_v38 = vpop.permute.xlu1 %589 }
  0xf0   : > { %v2437_v61 = vpop.permute.xlu0 %1004 }
  0xf1   : > { %v628_v52 = vmul.f32 %v586_v37, %v2498_v22  ;;  %v1816_v34 = vpop.eup %1815 }
  0xf3   : > { %849 = vrot.lane.b32.xlu1 %v808_v59, %s1899_s18  ;;  %847 = vrot.lane.b32.xlu0 %v807_v7, %s1899_s18  ;;  %v803_v7 = vmul.f32 %v2171_v14, %v2482_v56  ;;  %v602_v27 = vpop.permute.xlu1 %601 }
  0xf4   : > { %v2451_v55 = vpop.permute.xlu0 %1008 }
  0xf7   : > { %677 = vrot.lane.b32.xlu1 %v634_v57, %s1900_s19  ;;  %675 = vrot.lane.b32.xlu0 %v633_v11, %s1900_s19  ;;  %v1818_v11 = vpop.eup %1817  ;;  %v2527_v57 = vmul.f32 %v1816_v34, %v2052_v41  ;;  %v606_v0 = vpop.permute.xlu1 %605 }
  0xf8   : > { %v2458_v29 = vpop.permute.xlu0 %735  ;;  %v1820_v10 = vpop.eup %1819  ;;  %v2543_v43 = vmul.f32 %v1818_v11, %v2049_v40 }
  0xf9   : > { %v629_v14 = vmul.f32 %v2409_v62, %v2527_v57  ;;  %v2540_v41 = vmul.f32 %v1820_v10, %v2064_v47  ;;  %v1822_v62 = vpop.eup %1821  ;;  %v805_v47 = vmul.f32 %v2185_v18, %v2527_v57 }
  0xfa   : > { %v630_v4 = vmul.f32 %v590_v38, %v2543_v43 }
  0xfb   : > { %853 = vrot.lane.b32.xlu1 %v810_v49, %s1899_s18  ;;  %851 = vrot.lane.b32.xlu0 %v809_v48, %s1899_s18  ;;  %v804_v48 = vmul.f32 %v2180_v15, %v2498_v22  ;;  %v635_v42 = vmul.f32 %v2421_v2, %v2540_v41  ;;  %v2551_v15 = vmul.f32 %v1822_v62, %v2061_v46  ;;  %v1824_v2 = vpop.eup %1823  ;;  %v1007_v3 = vpop.permute.xlu1 %1006 }
  0xfc   : > { %v2468_v58 = vpop.permute.xlu0 %739  ;;  %v806_v46 = vmul.f32 %v2194_v19, %v2543_v43  ;;  %v811_v30 = vmul.f32 %v2199_v20, %v2540_v41  ;;  %v1826_v18 = vpop.eup %1825  ;;  %v3003_v20 = vld [vmem:[#allocation4_spill] sm:$0xff]  ;;  %v957_v62 = vmul.f32 %v3005_v45, %v2355_v54 }
  0xfd   : > { %v636_v40 = vmul.f32 %v602_v27, %v2551_v15  ;;  %v2574_v38 = vmul.f32 %v1826_v18, %v3002_v63  ;;  %v1016_v27 = vmul.f32 %v2437_v61, %v2358_v31  ;;  %v3007_v63 = vld [vmem:[#allocation8_spill] sm:$0xff] }
  0xff   : > { %749 = vrot.lane.b32.xlu1 %v2474_v13, %s1899_s18  ;;  %759 = vrot.lane.b32.xlu0 %v2479_v12, %s1899_s18  ;;  %v1011_v19 = vpop.permute.xlu1 %1010 }
 0x100   : > { %v2488_v21 = vpop.permute.xlu0 %751 }
 0x103   : > { %761 = vrot.lane.b32.xlu1 %v2495_v35, %s1899_s18  ;;  %663 = vrot.lane.b32.xlu0 %v627_v50, %s1900_s19  ;;  %v2565_v50 = vmul.f32 %v1824_v2, %v2076_v53  ;;  %v638_v53 = vmul.f32 %v606_v0, %v2574_v38 }
 0x104   : > { %v2503_v36 = vpop.permute.xlu0 %755 }
 0x105   : > { %v637_v37 = vmul.f32 %v2428_v23, %v2565_v50  ;;  %v813_v34 = vmul.f32 %v3003_v20, %v2565_v50  ;;  %v738_v23 = vpop.permute.xlu1 %737 }
 0x107   : > { %665 = vrot.lane.b32.xlu1 %v628_v52, %s1900_s19  ;;  %763 = vrot.lane.b32.xlu0 %v2510_v24, %s1899_s18  ;;  %v812_v52 = vmul.f32 %v3001_v6, %v2551_v15 }
 0x108   : > { %v744_v33 = vpop.permute.xlu0 %743 }
 0x109   : > { %v2516_v59 = vmul.f32 %v744_v33, %v2482_v56  ;;  %v3004_v33 = vld [vmem:[#allocation5_spill] sm:$0xff]  ;;  %v742_v25 = vpop.permute.xlu1 %741 }
 0x10b   : > { %765 = vrot.lane.b32.xlu1 %v2524_v5, %s1899_s18  ;;  %839 = vrot.lane.b32.xlu0 %v803_v7, %s1899_s18  ;;  %v814_v7 = vmul.f32 %v3004_v33, %v2574_v38 }
 0x10c   : > { %v748_v28 = vpop.permute.xlu0 %747 }
 0x10d   : > { %v2535_v49 = vmul.f32 %v748_v28, %v2527_v57  ;;  %v2586_v8 = vpop.permute.xlu1 %753 }
 0x10f   : > { %841 = vrot.lane.b32.xlu1 %v804_v48, %s1899_s18  ;;  %667 = vrot.lane.b32.xlu0 %v629_v14, %s1900_s19  ;;  %v1017_v48 = vmul.f32 %v1007_v3, %v2355_v54 }
 0x111   : > { %v2588_v11 = vpop.permute.xlu1 %757 }
 0x113   : > { %669 = vrot.lane.b32.xlu1 %v630_v4, %s1900_s19  ;;  %679 = vrot.lane.b32.xlu0 %v635_v42, %s1900_s19  ;;  %v3006_v42 = vld [vmem:[#allocation6_spill] sm:$0xff] }
 0x114   : > { %v956_v4 = vmul.f32 %v3006_v42, %v2358_v31  ;;  %v1018_v31 = vmul.f32 %v2451_v55, %v2329_v39 }
 0x115   : > { %v2590_v10 = vpop.permute.xlu1 %745 }
 0x117   : > { %681 = vrot.lane.b32.xlu1 %v636_v40, %s1900_s19  ;;  %843 = vrot.lane.b32.xlu0 %v805_v47, %s1899_s18 }
 0x11b   : > { %845 = vrot.lane.b32.xlu1 %v806_v46, %s1899_s18  ;;  %855 = vrot.lane.b32.xlu0 %v811_v30, %s1899_s18 }
 0x11f   : > { %857 = vrot.lane.b32.xlu1 %v812_v52, %s1899_s18  ;;  %683 = vrot.lane.b32.xlu0 %v637_v37, %s1900_s19  ;;  %v1019_v52 = vmul.f32 %v1011_v19, %v2371_v44  ;;  %v784_v19 = vmul.f32 %v738_v23, %v2385_v1 }
 0x123   : > { %685 = vrot.lane.b32.xlu1 %v638_v53, %s1900_s19  ;;  %859 = vrot.lane.b32.xlu0 %v813_v34, %s1899_s18  ;;  %v959_v53 = vmul.f32 %v3007_v63, %v2371_v44  ;;  %v783_v44 = vmul.f32 %v2458_v29, %v2382_v26  ;;  %v3011_v63 = vld [vmem:[#allocation12_spill] sm:$0xff] }
 0x127   : > { %861 = vrot.lane.b32.xlu1 %v814_v7, %s1899_s18  ;;  %v3008_v7 = vld [vmem:[#allocation20_spill] sm:$0xff]  ;;  %s2918_s18 = scalar_lea.vmem %s2963_s8, %s1711_s9 }
 0x141   : > { %v987_v28 = vpop.permute.xlu1 %986  ;;  %v985_v14 = vpop.permute.xlu0 %984 }
 0x142   : > { %v997_v47 = vadd.f32 %v987_v28, %v957_v62  ;;  %v996_v2 = vadd.f32 %v985_v14, %v956_v4  ;;  %v3009_v4 = vld [vmem:[#allocation10_spill] sm:$0xff] }
 0x145   : > { %v1031_v0 = vpop.permute.xlu1 %1030  ;;  %v1029_v40 = vpop.permute.xlu0 %1028 }
 0x146   : > { %v1041_v46 = vsub.f32 %v1017_v48, %v1031_v0  ;;  %v1040_v30 = vsub.f32 %v1016_v27, %v1029_v40  ;;  %v544_v0 = vmul.f32 %v3009_v4, %v2385_v1  ;;  %v3010_v40 = vld [vmem:[#allocation9_spill] sm:$0xff] }
 0x148   : > { %v1044_v18 = vsel %vm895_vm1, %v996_v2, %v1040_v30  ;;  %v1045_v37 = vsel %vm895_vm1, %v997_v47, %v1041_v46  ;;  %v543_v47 = vmul.f32 %v3010_v40, %v2382_v26  ;;  %v785_v26 = vmul.f32 %v2468_v58, %v2402_v51 }
 0x149   : > { %v991_v61 = vpop.permute.xlu1 %990  ;;  %v989_v6 = vpop.permute.xlu0 %988  ;;  %v1056_v3 = vpack.c.bf16 %v1045_v37, %v1044_v18 }
 0x14a   : > { %v999_v33 = vadd.f32 %v991_v61, %v959_v53  ;;  %v998_v28 = vadd.f32 %v989_v6, %v3008_v7  ;;  %v546_v53 = vmul.f32 %v3011_v63, %v2405_v60 }
 0x14b   : > { %1775 = vmatprep.subr.msk.bf16.mxu0 %vm397_vm0, %v1056_v3  ;;  %v1087_v54 = vsel %vm397_vm0, %v1056_v3, 0 }
 0x14c   : > { %1736 = vmatpush3.bf16.xpose.msra.mxu0 %v1087_v54 }
 0x14d   : > { %v1035_v20 = vpop.permute.xlu1 %1034  ;;  %v1033_v34 = vpop.permute.xlu0 %1032 }
 0x14e   : > { %v1043_v14 = vsub.f32 %v1019_v52, %v1035_v20  ;;  %v1042_v27 = vsub.f32 %v1018_v31, %v1033_v34  ;;  %v786_v52 = vmul.f32 %v742_v25, %v2405_v60  ;;  %v3012_v20 = vld [vmem:[#allocation11_spill] sm:$0xff]  ;;  %v791_v25 = vmul.f32 %v2488_v21, %v2414_v17 }
 0x14f   : > { %v545_v34 = vmul.f32 %v3012_v20, %v2402_v51  ;;  %v792_v60 = vmul.f32 %v2586_v8, %v2417_v16  ;;  %v793_v8 = vmul.f32 %v2503_v36, %v2444_v32 }
 0x150   : > { %v1046_v48 = vsel %vm895_vm1, %v998_v28, %v1042_v27  ;;  %v1047_v45 = vsel %vm895_vm1, %v999_v33, %v1043_v14 }
 0x151   : > { %v658_v62 = vpop.permute.xlu1 %657  ;;  %v656_v42 = vpop.permute.xlu0 %655  ;;  %v1057_v39 = vpack.c.bf16 %v1047_v45, %v1046_v48  ;;  %v3013_v45 = vld [vmem:[#allocation14_spill] sm:$0xff] }
 0x152   : > { %v704_v30 = vadd.f32 %v658_v62, %v544_v0  ;;  %v703_v18 = vadd.f32 %v656_v42, %v543_v47  ;;  %v552_v62 = vmul.f32 %v3013_v45, %v2417_v16  ;;  %v3014_v42 = vld [vmem:[#allocation13_spill] sm:$0xff]  ;;  %v3018_v45 = vld [vmem:[#allocation18_spill] sm:$0xff] }
 0x153   : > { %1776 = vmatprep.subr.msk.bf16.mxu1 %vm397_vm0, %v1057_v39  ;;  %v1167_v55 = vsel %vm397_vm0, %v1057_v39, 0  ;;  %v551_v58 = vmul.f32 %v3014_v42, %v2414_v17 }
 0x154   : > { %1746 = vmatpush3.bf16.xpose.msra.mxu1 %v1167_v55 }
 0x155   : > { %v834_v2 = vpop.permute.xlu1 %833  ;;  %v832_v46 = vpop.permute.xlu0 %831 }
 0x156   : > { %v880_v37 = vsub.f32 %v784_v19, %v834_v2  ;;  %v879_v61 = vsub.f32 %v783_v44, %v832_v46 }
 0x158   : > { %v896_v6 = vsel %vm895_vm1, %v703_v18, %v879_v61  ;;  %v897_v3 = vsel %vm895_vm1, %v704_v30, %v880_v37  ;;  %v794_v30 = vmul.f32 %v2588_v11, %v2447_v9  ;;  %v3015_v18 = vld [vmem:[#allocation16_spill] sm:$0xff]  ;;  %v3016_v61 = vld [vmem:[#allocation15_spill] sm:$0xff] }
 0x159   : > { %v662_v29 = vpop.permute.xlu1 %661  ;;  %v660_v54 = vpop.permute.xlu0 %659  ;;  %v1048_v23 = vpack.c.bf16 %v897_v3, %v896_v6  ;;  %v554_v37 = vmul.f32 %v3015_v18, %v2447_v9  ;;  %v553_v6 = vmul.f32 %v3016_v61, %v2444_v32  ;;  %v3017_v32 = vld [vmem:[#allocation17_spill] sm:$0xff] }
 0x15a   : > { %v706_v28 = vadd.f32 %v662_v29, %v546_v53  ;;  %v705_v14 = vadd.f32 %v660_v54, %v545_v34 }
 0x15b   : > { %1737 = vmatprep.mubr.msk.bf16.mxu0 %vm397_vm0, %v1048_v23 }
 0x15d   : > { %v674_v1 = vpop.permute.xlu1 %673  ;;  %v672_v31 = vpop.permute.xlu0 %671 }
 0x15e   : > { %v712_v4 = vadd.f32 %v674_v1, %v552_v62  ;;  %v711_v0 = vadd.f32 %v672_v31, %v551_v58  ;;  %v548_v62 = vmul.f32 %v3018_v45, %v2498_v22 }
 0x161   : > { %v838_v33 = vpop.permute.xlu1 %837  ;;  %v836_v7 = vpop.permute.xlu0 %835 }
 0x162   : > { %v882_v27 = vsub.f32 %v786_v52, %v838_v33  ;;  %v881_v48 = vsub.f32 %v785_v26, %v836_v7  ;;  %v547_v33 = vmul.f32 %v3017_v32, %v2482_v56  ;;  %v1060_v32 = vld [vmem:[%s2959_s4 + $0x10] sm:$0xff] }
 0x164   : > { %v899_v51 = vsel %vm895_vm1, %v706_v28, %v882_v27  ;;  %v898_v39 = vsel %vm895_vm1, %v705_v14, %v881_v48  ;;  %v788_v48 = vmul.f32 %v2590_v10, %v2498_v22 }
 0x165   : > { %v1049_v55 = vpack.c.bf16 %v899_v51, %v898_v39  ;;  %v850_v44 = vpop.permute.xlu1 %849  ;;  %v848_v19 = vpop.permute.xlu0 %847 }
 0x166   : > { %v888_v40 = vsub.f32 %v792_v60, %v850_v44  ;;  %v887_v47 = vsub.f32 %v791_v25, %v848_v19 }
 0x167   : > { %1738 = vmatmul.mubr.msk.bf16.vlgmr.msra.gmra.mrb[0].mxu0 %vm397_vm0, %v1049_v55 }
 0x168   : > { %v904_v2 = vsel %vm895_vm1, %v711_v0, %v887_v47  ;;  %v905_v17 = vsel %vm895_vm1, %v712_v4, %v888_v40  ;;  %v550_v47 = vmul.f32 %v2474_v13, %v2543_v43 }
 0x169   : > { %v678_v21 = vpop.permute.xlu1 %677  ;;  %v676_v46 = vpop.permute.xlu0 %675  ;;  %v1052_v16 = vpack.c.bf16 %v905_v17, %v904_v2 }
 0x16a   : > { %v714_v54 = vadd.f32 %v678_v21, %v554_v37  ;;  %v713_v23 = vadd.f32 %v676_v46, %v553_v6 }
 0x16b   : > { %1747 = vmatprep.mubr.msk.bf16.mxu1 %vm397_vm0, %v1052_v16 }
 0x16d   : > { %v854_v3 = vpop.permute.xlu1 %853  ;;  %v852_v29 = vpop.permute.xlu0 %851 }
 0x16e   : > { %v890_v1 = vsub.f32 %v794_v30, %v854_v3  ;;  %v889_v31 = vsub.f32 %v793_v8, %v852_v29 }
 0x170   : > { %v907_v26 = vsel %vm895_vm1, %v714_v54, %v890_v1  ;;  %v906_v52 = vsel %vm895_vm1, %v713_v23, %v889_v31  ;;  %v557_v31 = vmul.f32 %v2510_v24, %v2565_v50 }
 0x171   : > { %v1053_v36 = vpack.c.bf16 %v907_v26, %v906_v52  ;;  %v750_v63 = vpop.permute.xlu1 %749  ;;  %v760_v53 = vpop.permute.xlu0 %759  ;;  %v558_v26 = vmul.f32 %v2524_v5, %v2574_v38 }
 0x172   : > { %v790_v40 = vmul.f32 %v750_v63, %v2543_v43  ;;  %v795_v46 = vmul.f32 %v760_v53, %v2540_v41 }
 0x173   : > { %1748 = vmatmul.mubr.msk.bf16.vlgmr.msra.gmra.mrb[0].mxu1 %vm397_vm0, %v1053_v36 }
 0x175   : > { %v762_v11 = vpop.permute.xlu1 %761  ;;  %v664_v9 = vpop.permute.xlu0 %663 }
 0x176   : > { %v707_v14 = vadd.f32 %v664_v9, %v547_v33  ;;  %v796_v30 = vmul.f32 %v762_v11, %v2551_v15 }
 0x179   : > { %v666_v20 = vpop.permute.xlu1 %665  ;;  %v764_v34 = vpop.permute.xlu0 %763 }
 0x17a   : > { %v708_v60 = vadd.f32 %v666_v20, %v548_v62 }
 0x17d   : > { %v766_v7 = vpop.permute.xlu1 %765  ;;  %v840_v28 = vpop.permute.xlu0 %839 }
 0x17e   : > { %v883_v27 = vsub.f32 %v2516_v59, %v840_v28  ;;  %v3019_v59 = vld [vmem:[#allocation19_spill] sm:$0xff]  ;;  %v1068_v28 = vld [vmem:[%s2959_s4 + $0x50] sm:$0xff] }
 0x17f   : > { %v549_v19 = vmul.f32 %v3019_v59, %v2527_v57  ;;  %v556_v57 = vmul.f32 %v2495_v35, %v2551_v15  ;;  %v1067_v59 = vld [vmem:[%s2959_s4 + $0x48] sm:$0xff] }
 0x180   : > { %v900_v42 = vsel %vm895_vm1, %v707_v14, %v883_v27  ;;  %v1058_v14 = vld [vmem:[%s2959_s4] sm:$0xff] }
 0x181   : > { %v842_v58 = vpop.permute.xlu1 %841  ;;  %v668_v25 = vpop.permute.xlu0 %667 }
 0x182   : > { %v884_v51 = vsub.f32 %v788_v48, %v842_v58  ;;  %v709_v0 = vadd.f32 %v668_v25, %v549_v19  ;;  %v1069_v48 = vld [vmem:[%s2959_s4 + $0x58] sm:$0xff] }
 0x184   : > { %v901_v39 = vsel %vm895_vm1, %v708_v60, %v884_v51 }
 0x185   : > { %v1050_v56 = vpack.c.bf16 %v901_v39, %v900_v42  ;;  %v670_v55 = vpop.permute.xlu1 %669  ;;  %v680_v44 = vpop.permute.xlu0 %679  ;;  %v1059_v42 = vld [vmem:[%s2959_s4 + $0x8] sm:$0xff] }
 0x186   : > { %v710_v16 = vadd.f32 %v670_v55, %v550_v47 }
 0x187   : > { %1741 = vmatprep.mubr.msk.bf16.mxu0 %vm397_vm0, %v1050_v56  ;;  %v1066_v56 = vld [vmem:[%s2959_s4 + $0x40] sm:$0xff] }
 0x189   : > { %v682_v10 = vpop.permute.xlu1 %681  ;;  %v844_v4 = vpop.permute.xlu0 %843 }
 0x18a   : > { %v885_v22 = vsub.f32 %v2535_v49, %v844_v4  ;;  %v555_v49 = vmul.f32 %v2479_v12, %v2540_v41  ;;  %v716_v3 = vadd.f32 %v682_v10, %v556_v57  ;;  %v797_v12 = vmul.f32 %v764_v34, %v2565_v50  ;;  %v1061_v4 = vld [vmem:[%s2959_s4 + $0x18] sm:$0xff] }
 0x18b   : > { %v798_v41 = vmul.f32 %v766_v7, %v2574_v38 }
 0x18c   : > { %v902_v2 = vsel %vm895_vm1, %v709_v0, %v885_v22  ;;  %v715_v6 = vadd.f32 %v680_v44, %v555_v49 }
 0x18d   : > { %v846_v17 = vpop.permute.xlu1 %845  ;;  %v856_v21 = vpop.permute.xlu0 %855 }
 0x18e   : > { %v886_v8 = vsub.f32 %v790_v40, %v846_v17  ;;  %v891_v37 = vsub.f32 %v795_v46, %v856_v21  ;;  %v1064_v21 = vld [vmem:[%s2959_s4 + $0x30] sm:$0xff] }
 0x190   : > { %v903_v18 = vsel %vm895_vm1, %v710_v16, %v886_v8  ;;  %v908_v54 = vsel %vm895_vm1, %v715_v6, %v891_v37  ;;  %v1062_v16 = vld [vmem:[%s2959_s4 + $0x20] sm:$0xff]  ;;  %v1065_v8 = vld [vmem:[%s2959_s4 + $0x38] sm:$0xff] }
 0x191   : > { %v1051_v13 = vpack.c.bf16 %v903_v18, %v902_v2  ;;  %v858_v43 = vpop.permute.xlu1 %857  ;;  %v684_v61 = vpop.permute.xlu0 %683  ;;  %v1063_v18 = vld [vmem:[%s2959_s4 + $0x28] sm:$0xff] }
 0x192   : > { %v892_v29 = vsub.f32 %v796_v30, %v858_v43  ;;  %v717_v63 = vadd.f32 %v684_v61, %v557_v31 }
 0x193   : > { %1742 = vmatmul.mubr.msk.bf16.gmra.mrb[4].mxu0 %vm397_vm0, %v1051_v13 }
 0x194   : > { %v909_v35 = vsel %vm895_vm1, %v716_v3, %v892_v29 }
 0x195   : > { %v1054_v23 = vpack.c.bf16 %v909_v35, %v908_v54  ;;  %v686_v15 = vpop.permute.xlu1 %685  ;;  %v860_v1 = vpop.permute.xlu0 %859  ;;  %v1070_v35 = vld [vmem:[%s2959_s4 + $0x60] sm:$0xff] }
 0x196   : > { %v893_v52 = vsub.f32 %v797_v12, %v860_v1  ;;  %v718_v53 = vadd.f32 %v686_v15, %v558_v26  ;;  %v1072_v15 = vld [vmem:[%s2959_s4 + $0x70] sm:$0xff]  ;;  %v1071_v12 = vld [vmem:[%s2959_s4 + $0x68] sm:$0xff]  ;;  %v1073_v26 = vld [vmem:[%s2959_s4 + $0x78] sm:$0xff] }
 0x197   : > { %1751 = vmatprep.mubr.msk.bf16.mxu1 %vm397_vm0, %v1054_v23 }
 0x198   : > { %v910_v9 = vsel %vm895_vm1, %v717_v63, %v893_v52 }
 0x199   : > { %v862_v36 = vpop.permute.xlu1 %861 }
 0x19a   : > { %v894_v11 = vsub.f32 %v798_v41, %v862_v36 }
 0x19c   : > { %v911_v20 = vsel %vm895_vm1, %v718_v53, %v894_v11 }
 0x19d   : > { %v1055_v34 = vpack.c.bf16 %v911_v20, %v910_v9 }
 0x19f   : > { %1752 = vmatmul.mubr.msk.bf16.gmra.mrb[4].mxu1 %vm397_vm0, %v1055_v34 }
 0x23a   : > { %v1739_v24 = vpop.f32.mrb[0].mxu0 }
 0x23b   : > { %v2695_v50 = vadd.f32 %v1739_v24, %v1060_v32  ;;  %v1123_v5 = vpop.f32.mrb[1].mxu0 }
 0x23c   : > { %v1740_v38 = vpop.f32.mrb[2].mxu0  ;;  %v2713_v25 = vadd.f32 %v1123_v5, %v1058_v14 }
 0x23d   : > { %v1126_v33 = vpop.f32.mrb[3].mxu0  ;;  %v1240_v7 = vsel %vm397_vm0, %v2695_v50, -inf  ;;  %v2740_v40 = vadd.f32 %v1740_v38, %v1061_v4 }
 0x23e   : > { %1241 = vmax.xlane.f32.xlu0 %v1240_v7  ;;  %v2722_v55 = vadd.f32 %v1126_v33, %v1059_v42  ;;  %v1234_v10 = vsel %vm397_vm0, %v2713_v25, -inf }
 0x23f   : > { %v1243_v17 = vsel %vm397_vm0, %v2740_v40, -inf }
 0x240   : > { %v1237_v22 = vsel %vm397_vm0, %v2722_v55, -inf }
 0x246   : > { %v1749_v27 = vpop.f32.mrb[0].mxu1 }
 0x247   : > { %v2708_v45 = vadd.f32 %v1749_v27, %v1068_v28  ;;  %v1203_v62 = vpop.f32.mrb[1].mxu1 }
 0x248   : > { %v1750_v58 = vpop.f32.mrb[2].mxu1  ;;  %v2729_v19 = vadd.f32 %v1203_v62, %v1066_v56 }
 0x249   : > { %v2715_v60 = vadd.f32 %v1750_v58, %v1069_v48  ;;  %v1206_v51 = vpop.f32.mrb[3].mxu1  ;;  %v1264_v39 = vsel %vm397_vm0, %v2708_v45, -inf }
 0x24a   : > { %1265 = vmax.xlane.f32.xlu0 %v1264_v39  ;;  %v2736_v0 = vadd.f32 %v1206_v51, %v1067_v59  ;;  %v1258_v47 = vsel %vm397_vm0, %v2729_v19, -inf }
 0x24b   : > { %v1267_v44 = vsel %vm397_vm0, %v2715_v60, -inf }
 0x24c   : > { %1268 = vmax.xlane.f32.xlu1 %v1267_v44  ;;  %v1261_v2 = vsel %vm397_vm0, %v2736_v0, -inf }
 0x24e   : > { %1235 = vmax.xlane.f32.xlu0 %v1234_v10 }
 0x250   : > { %1238 = vmax.xlane.f32.xlu1 %v1237_v22 }
 0x252   : > { %1259 = vmax.xlane.f32.xlu0 %v1258_v47 }
 0x254   : > { %1262 = vmax.xlane.f32.xlu1 %v1261_v2 }
 0x256   : > { %1244 = vmax.xlane.f32.xlu0 %v1243_v17 }
 0x266   : > { %v1743_v46 = vpop.f32.mrb[4].mxu0 }
 0x267   : > { %v2757_v57 = vadd.f32 %v1743_v46, %v1064_v21  ;;  %v1139_v30 = vpop.f32.mrb[5].mxu0 }
 0x268   : > { %v1744_v49 = vpop.f32.mrb[6].mxu0  ;;  %v2762_v37 = vadd.f32 %v1139_v30, %v1062_v16 }
 0x269   : > { %v2764_v13 = vadd.f32 %v1744_v49, %v1065_v8  ;;  %v1142_v43 = vpop.f32.mrb[7].mxu0  ;;  %v1252_v61 = vsel %vm397_vm0, %v2757_v57, -inf }
 0x26a   : > { %1253 = vmax.xlane.f32.xlu0 %v1252_v61  ;;  %v2768_v6 = vadd.f32 %v1142_v43, %v1063_v18  ;;  %v1246_v29 = vsel %vm397_vm0, %v2762_v37, -inf }
 0x26b   : > { %v1255_v3 = vsel %vm397_vm0, %v2764_v13, -inf }
 0x26c   : > { %1256 = vmax.xlane.f32.xlu1 %v1255_v3  ;;  %v1249_v54 = vsel %vm397_vm0, %v2768_v6, -inf }
 0x26e   : > { %1247 = vmax.xlane.f32.xlu0 %v1246_v29 }
 0x270   : > { %1250 = vmax.xlane.f32.xlu1 %v1249_v54 }
 0x272   : > { %v1753_v23 = vpop.f32.mrb[4].mxu1 }
 0x273   : > { %v1219_v1 = vpop.f32.mrb[5].mxu1  ;;  %v2790_v36 = vadd.f32 %v1753_v23, %v1072_v15 }
 0x274   : > { %v2785_v41 = vadd.f32 %v1219_v1, %v1070_v35  ;;  %v1754_v31 = vpop.f32.mrb[6].mxu1 }
 0x275   : > { %v1222_v52 = vpop.f32.mrb[7].mxu1  ;;  %v2796_v11 = vadd.f32 %v1754_v31, %v1073_v26  ;;  %v1276_v20 = vsel %vm397_vm0, %v2790_v36, -inf }
 0x276   : > { %v2792_v63 = vadd.f32 %v1222_v52, %v1071_v12  ;;  %v1270_v53 = vsel %vm397_vm0, %v2785_v41, -inf }
 0x277   : > { %1271 = vmax.xlane.f32.xlu0 %v1270_v53  ;;  %v1279_v34 = vsel %vm397_vm0, %v2796_v11, -inf }
 0x278   : > { %v1273_v9 = vsel %vm397_vm0, %v2792_v63, -inf }
 0x279   : > { %1274 = vmax.xlane.f32.xlu1 %v1273_v9 }
 0x27b   : > { %1277 = vmax.xlane.f32.xlu0 %v1276_v20 }
 0x27d   : > { %1280 = vmax.xlane.f32.xlu1 %v1279_v34 }
 0x2cb   : > { %v1242_v32 = vpop.xlane.xlu0 %1241 }
 0x2cc   : > { %v1284_v24 = vsub.f32 %v2695_v50, %v1242_v32 }
 0x2ce   : > { %v1302_v5 = vmul.f32 1.442695, %v1284_v24 }
 0x2d0   : > { %1827 = vpow2.f32 %v1302_v5 }
 0x2d7   : > { %v1266_v38 = vpop.xlane.xlu0 %1265 }
 0x2d8   : > { %v1292_v33 = vsub.f32 %v2708_v45, %v1266_v38 }
 0x2d9   : > { %v1269_v14 = vpop.xlane.xlu1 %1268 }
 0x2da   : > { %v2806_v7 = vpop.eup %1827  ;;  %v1318_v28 = vmul.f32 1.442695, %v1292_v33  ;;  %v1293_v45 = vsub.f32 %v2715_v60, %v1269_v14 }
 0x2db   : > { %v1236_v27 = vpop.xlane.xlu0 %1235  ;;  %v1336_v48 = vsel %vm397_vm0, %v2806_v7, 0.0 }
 0x2dc   : > { %1829 = vpow2.f32 %v1318_v28  ;;  %v1282_v62 = vsub.f32 %v2713_v25, %v1236_v27  ;;  %1337 = vadd.xlane.f32.xlu0 %v1336_v48  ;;  %v1320_v10 = vmul.f32 1.442695, %v1293_v45 }
 0x2dd   : > { %v1239_v51 = vpop.xlane.xlu1 %1238 }
 0x2de   : > { %v1298_v42 = vmul.f32 1.442695, %v1282_v62  ;;  %v1283_v4 = vsub.f32 %v2722_v55, %v1239_v51 }
 0x2df   : > { %v1260_v58 = vpop.xlane.xlu0 %1259 }
 0x2e0   : > { %1831 = vpow2.f32 %v1298_v42  ;;  %v1290_v50 = vsub.f32 %v2729_v19, %v1260_v58  ;;  %v1300_v60 = vmul.f32 1.442695, %v1283_v4  ;;  %v1419_v42 = vld [vmem:[%s355_s10 + $0x8] sm:$0xff] }
 0x2e1   : > { %v1263_v22 = vpop.xlane.xlu1 %1262 }
 0x2e2   : > { %v1314_v39 = vmul.f32 1.442695, %v1290_v50  ;;  %v1291_v2 = vsub.f32 %v2736_v0, %v1263_v22 }
 0x2e3   : > { %v1245_v56 = vpop.xlane.xlu0 %1244 }
 0x2e4   : > { %1833 = vpow2.f32 %v1314_v39  ;;  %v1285_v44 = vsub.f32 %v2740_v40, %v1245_v56  ;;  %v1316_v55 = vmul.f32 1.442695, %v1291_v2  ;;  %v1420_v56 = vld [vmem:[%s355_s10 + $0x10] sm:$0xff] }
 0x2e6   : > { %v2814_v59 = vpop.eup %1829  ;;  %v1304_v25 = vmul.f32 1.442695, %v1285_v44  ;;  %v1421_v44 = vld [vmem:[%s355_s10 + $0x18] sm:$0xff] }
 0x2e7   : > { %v1360_v47 = vsel %vm397_vm0, %v2814_v59, 0.0  ;;  %v1423_v4 = vpack.c.bf16 %v1421_v44, %v1420_v56 }
 0x2e8   : > { %1835 = vpow2.f32 %v1304_v25  ;;  %1361 = vadd.xlane.f32.xlu0 %v1360_v47 }
 0x2e9   : > { %1837 = vpow2.f32 %v1320_v10  ;;  %1765 = vmatprep.subr.bf16.mxu1 %v1423_v4 }
 0x2ea   : > { %v2819_v19 = vpop.eup %1831  ;;  %1839 = vpow2.f32 %v1300_v60  ;;  %1766 = vmatpush3.bf16.msra.mxu1 %v1423_v4 }
 0x2eb   : > { %v1330_v40 = vsel %vm397_vm0, %v2819_v19, 0.0  ;;  %1841 = vpow2.f32 %v1316_v55 }
 0x2ec   : > { %1331 = vadd.xlane.f32.xlu0 %v1330_v40 }
 0x2ee   : > { %v2824_v17 = vpop.eup %1833 }
 0x2ef   : > { %v1354_v21 = vsel %vm397_vm0, %v2824_v17, 0.0 }
 0x2f0   : > { %1355 = vadd.xlane.f32.xlu0 %v1354_v21 }
 0x2f2   : > { %v2828_v46 = vpop.eup %1835 }
 0x2f3   : > { %v1339_v16 = vsel %vm397_vm0, %v2828_v46, 0.0  ;;  %v2832_v8 = vpop.eup %1837 }
 0x2f4   : > { %1340 = vadd.xlane.f32.xlu1 %v1339_v16  ;;  %v1363_v30 = vsel %vm397_vm0, %v2832_v8, 0.0  ;;  %v2836_v49 = vpop.eup %1839 }
 0x2f5   : > { %v1333_v54 = vsel %vm397_vm0, %v2836_v49, 0.0  ;;  %v2842_v35 = vpop.eup %1841 }
 0x2f6   : > { %v1357_v31 = vsel %vm397_vm0, %v2842_v35, 0.0 }
 0x2f7   : > { %v1254_v0 = vpop.xlane.xlu0 %1253 }
 0x2f8   : > { %v1288_v18 = vsub.f32 %v2757_v57, %v1254_v0  ;;  %1364 = vadd.xlane.f32.xlu1 %v1363_v30 }
 0x2f9   : > { %v1257_v43 = vpop.xlane.xlu1 %1256 }
 0x2fa   : > { %v1310_v61 = vmul.f32 1.442695, %v1288_v18  ;;  %v1289_v3 = vsub.f32 %v2764_v13, %v1257_v43 }
 0x2fb   : > { %v1248_v29 = vpop.xlane.xlu0 %1247 }
 0x2fc   : > { %1843 = vpow2.f32 %v1310_v61  ;;  %v1312_v23 = vmul.f32 1.442695, %v1289_v3  ;;  %v1286_v15 = vsub.f32 %v2762_v37, %v1248_v29  ;;  %1334 = vadd.xlane.f32.xlu1 %v1333_v54 }
 0x2fd   : > { %v1251_v1 = vpop.xlane.xlu1 %1250 }
 0x2fe   : > { %1845 = vpow2.f32 %v1312_v23  ;;  %v1306_v12 = vmul.f32 1.442695, %v1286_v15  ;;  %v1287_v57 = vsub.f32 %v2768_v6, %v1251_v1 }
 0x300   : > { %1847 = vpow2.f32 %v1306_v12  ;;  %v1308_v13 = vmul.f32 1.442695, %v1287_v57  ;;  %1358 = vadd.xlane.f32.xlu1 %v1357_v31 }
 0x302   : > { %1849 = vpow2.f32 %v1308_v13 }
 0x304   : > { %v1272_v26 = vpop.xlane.xlu0 %1271 }
 0x305   : > { %v1294_v52 = vsub.f32 %v2785_v41, %v1272_v26 }
 0x306   : > { %v2849_v53 = vpop.eup %1843  ;;  %v1275_v9 = vpop.xlane.xlu1 %1274 }
 0x307   : > { %v1322_v37 = vmul.f32 1.442695, %v1294_v52  ;;  %v1295_v20 = vsub.f32 %v2792_v63, %v1275_v9  ;;  %v1348_v34 = vsel %vm397_vm0, %v2849_v53, 0.0 }
 0x308   : > { %v2854_v6 = vpop.eup %1845  ;;  %1349 = vadd.xlane.f32.xlu0 %v1348_v34  ;;  %v1278_v32 = vpop.xlane.xlu0 %1277 }
 0x309   : > { %1851 = vpow2.f32 %v1322_v37  ;;  %v1324_v24 = vmul.f32 1.442695, %v1295_v20  ;;  %v1296_v5 = vsub.f32 %v2790_v36, %v1278_v32  ;;  %v1351_v41 = vsel %vm397_vm0, %v2854_v6, 0.0 }
 0x30a   : > { %v2859_v38 = vpop.eup %1847  ;;  %v1281_v33 = vpop.xlane.xlu1 %1280  ;;  %1352 = vadd.xlane.f32.xlu1 %v1351_v41 }
 0x30b   : > { %1853 = vpow2.f32 %v1324_v24  ;;  %v1326_v63 = vmul.f32 1.442695, %v1296_v5  ;;  %v1297_v28 = vsub.f32 %v2796_v11, %v1281_v33  ;;  %v1342_v14 = vsel %vm397_vm0, %v2859_v38, 0.0  ;;  %v1418_v11 = vld [vmem:[%s355_s10] sm:$0xff] }
 0x30c   : > { %v2864_v27 = vpop.eup %1849  ;;  %1343 = vadd.xlane.f32.xlu0 %v1342_v14  ;;  %v1422_v50 = vpack.c.bf16 %v1419_v42, %v1418_v11 }
 0x30d   : > { %1855 = vpow2.f32 %v1326_v63  ;;  %v1328_v36 = vmul.f32 1.442695, %v1297_v28  ;;  %v1345_v48 = vsel %vm397_vm0, %v2864_v27, 0.0 }
 0x30e   : > { %1346 = vadd.xlane.f32.xlu1 %v1345_v48  ;;  %1755 = vmatprep.subr.bf16.mxu0 %v1422_v50 }
 0x30f   : > { %1857 = vpow2.f32 %v1328_v36  ;;  %1756 = vmatpush3.bf16.msra.mxu0 %v1422_v50 }
 0x313   : > { %v2873_v62 = vpop.eup %1851 }
 0x314   : > { %v1366_v58 = vsel %vm397_vm0, %v2873_v62, 0.0 }
 0x315   : > { %v2877_v51 = vpop.eup %1853  ;;  %1367 = vadd.xlane.f32.xlu0 %v1366_v58 }
 0x316   : > { %v1369_v45 = vsel %vm397_vm0, %v2877_v51, 0.0 }
 0x317   : > { %v2881_v39 = vpop.eup %1855  ;;  %1370 = vadd.xlane.f32.xlu1 %v1369_v45 }
 0x318   : > { %v1372_v10 = vsel %vm397_vm0, %v2881_v39, 0.0 }
 0x319   : > { %v2885_v25 = vpop.eup %1857  ;;  %1373 = vadd.xlane.f32.xlu0 %v1372_v10 }
 0x31a   : > { %v1375_v22 = vsel %vm397_vm0, %v2885_v25, 0.0 }
 0x31b   : > { %1376 = vadd.xlane.f32.xlu1 %v1375_v22 }
 0x369   : > { %v1338_v47 = vpop.xlane.xlu0 %1337 }
 0x375   : > { %v1362_v60 = vpop.xlane.xlu0 %1361 }
 0x379   : > { %v1332_v40 = vpop.xlane.xlu0 %1331 }
 0x37d   : > { %v1356_v21 = vpop.xlane.xlu0 %1355 }
 0x381   : > { %v1341_v2 = vpop.xlane.xlu1 %1340 }
 0x382   : > { %1859 = vrcp.f32 %v1341_v2 }
 0x383   : > { %1861 = vrcp.f32 %v1332_v40 }
 0x384   : > { %1863 = vrcp.f32 %v1338_v47 }
 0x385   : > { %v1365_v55 = vpop.xlane.xlu1 %1364 }
 0x389   : > { %v1335_v16 = vpop.xlane.xlu1 %1334 }
 0x38a   : > { %1865 = vrcp.f32 %v1335_v16 }
 0x38b   : > { %1867 = vrcp.f32 %v1365_v55 }
 0x38c   : > { %1869 = vrcp.f32 %v1356_v21  ;;  %v1860_v30 = vpop.eup %1859 }
 0x38d   : > { %1871 = vrcp.f32 %v1362_v60  ;;  %v1359_v0 = vpop.xlane.xlu1 %1358  ;;  %v1862_v18 = vpop.eup %1861  ;;  %v1397_v3 = vmul.f32 %v1860_v30, %v2828_v46 }
 0x38e   : > { %1873 = vrcp.f32 %v1359_v0  ;;  %v1864_v43 = vpop.eup %1863  ;;  %v1394_v23 = vmul.f32 %v1862_v18, %v2819_v19 }
 0x38f   : > { %v1396_v12 = vmul.f32 %v1864_v43, %v2806_v7 }
 0x391   : > { %v1411_v52 = vpack.c.bf16 %v1397_v3, %v1396_v12 }
 0x394   : > { %v1866_v61 = vpop.eup %1865 }
 0x395   : > { %v1868_v29 = vpop.eup %1867  ;;  %v1350_v54 = vpop.xlane.xlu0 %1349  ;;  %v1395_v15 = vmul.f32 %v1866_v61, %v2836_v49 }
 0x396   : > { %v1870_v1 = vpop.eup %1869  ;;  %v1405_v9 = vmul.f32 %v1868_v29, %v2832_v8 }
 0x397   : > { %v1872_v57 = vpop.eup %1871  ;;  %v1353_v31 = vpop.xlane.xlu1 %1352  ;;  %v1410_v13 = vpack.c.bf16 %v1395_v15, %v1394_v23  ;;  %v1402_v37 = vmul.f32 %v1870_v1, %v2824_v17 }
 0x398   : > { %v1874_v26 = vpop.eup %1873  ;;  %1875 = vrcp.f32 %v1353_v31  ;;  %v1404_v49 = vmul.f32 %v1872_v57, %v2814_v59 }
 0x399   : > { %1757 = vmatprep.mubr.msk.bf16.mxu0 %vm397_vm0, %v1410_v13  ;;  %v1344_v46 = vpop.xlane.xlu0 %1343  ;;  %v1403_v19 = vmul.f32 %v1874_v26, %v2842_v35 }
 0x39a   : > { %1877 = vrcp.f32 %v1344_v46  ;;  %1758 = vmatmul.mubr.msk.bf16.vlgmr.msra.gmra.mrb[8].mxu0 %vm397_vm0, %v1411_v52  ;;  %v1415_v34 = vpack.c.bf16 %v1405_v9, %v1404_v49 }
 0x39b   : > { %1879 = vrcp.f32 %v1350_v54  ;;  %v1347_v7 = vpop.xlane.xlu1 %1346  ;;  %v1414_v20 = vpack.c.bf16 %v1403_v19, %v1402_v37 }
 0x39c   : > { %1881 = vrcp.f32 %v1347_v7 }
 0x39d   : > { %1767 = vmatprep.mubr.msk.bf16.mxu1 %vm397_vm0, %v1414_v20 }
 0x39e   : > { %1768 = vmatmul.mubr.msk.bf16.vlgmr.msra.gmra.mrb[8].mxu1 %vm397_vm0, %v1415_v34 }
 0x3a2   : > { %v1368_v8 = vpop.xlane.xlu0 %1367  ;;  %v1876_v32 = vpop.eup %1875 }
 0x3a3   : > { %1883 = vrcp.f32 %v1368_v8  ;;  %v1401_v41 = vmul.f32 %v1876_v32, %v2854_v6 }
 0x3a4   : > { %v1878_v17 = vpop.eup %1877  ;;  %v1371_v24 = vpop.xlane.xlu1 %1370 }
 0x3a5   : > { %v1880_v35 = vpop.eup %1879  ;;  %1885 = vrcp.f32 %v1371_v24  ;;  %v1398_v33 = vmul.f32 %v1878_v17, %v2859_v38 }
 0x3a6   : > { %v1882_v59 = vpop.eup %1881  ;;  %v1374_v5 = vpop.xlane.xlu0 %1373  ;;  %v1400_v14 = vmul.f32 %v1880_v35, %v2849_v53 }
 0x3a7   : > { %1887 = vrcp.f32 %v1374_v5  ;;  %v1399_v63 = vmul.f32 %v1882_v59, %v2864_v27 }
 0x3a8   : > { %v1377_v28 = vpop.xlane.xlu1 %1376  ;;  %v1413_v48 = vpack.c.bf16 %v1401_v41, %v1400_v14 }
 0x3a9   : > { %1889 = vrcp.f32 %v1377_v28  ;;  %v1412_v36 = vpack.c.bf16 %v1399_v63, %v1398_v33 }
 0x3ab   : > { %1761 = vmatprep.mubr.msk.bf16.mxu0 %vm397_vm0, %v1412_v36 }
 0x3ac   : > { %1762 = vmatmul.mubr.msk.bf16.gmra.mrb[12].mxu0 %vm397_vm0, %v1413_v48 }
 0x3ad   : > { %v1884_v11 = vpop.eup %1883 }
 0x3ae   : > { %v1406_v6 = vmul.f32 %v1884_v11, %v2873_v62 }
 0x3af   : > { %v1886_v42 = vpop.eup %1885 }
 0x3b0   : > { %v1407_v58 = vmul.f32 %v1886_v42, %v2877_v51 }
 0x3b1   : > { %v1888_v38 = vpop.eup %1887 }
 0x3b2   : > { %v1416_v50 = vpack.c.bf16 %v1407_v58, %v1406_v6  ;;  %v1408_v53 = vmul.f32 %v1888_v38, %v2881_v39 }
 0x3b3   : > { %v1890_v27 = vpop.eup %1889 }
 0x3b4   : > { %1771 = vmatprep.mubr.msk.bf16.mxu1 %vm397_vm0, %v1416_v50  ;;  %v1409_v45 = vmul.f32 %v1890_v27, %v2885_v25 }
 0x3b6   : > { %v1417_v56 = vpack.c.bf16 %v1409_v45, %v1408_v53 }
 0x3b8   : > { %1772 = vmatmul.mubr.msk.bf16.gmra.mrb[12].mxu1 %vm397_vm0, %v1417_v56 }
 0x46d   : > { %v1759_v62 = vpop.f32.mrb[8].mxu0 }
 0x46e   : > { %1580 = vst.msk [vmem:[%s2918_s18 + $0x10] sm:$0xff] %vm397_vm0, %v1759_v62  ;;  %v1470_v51 = vpop.f32.mrb[9].mxu0 }
 0x46f   : > { %1578 = vst.msk [vmem:[%s2918_s18] sm:$0xff] %vm397_vm0, %v1470_v51  ;;  %v1760_v39 = vpop.f32.mrb[10].mxu0 }
 0x470   : > { %1581 = vst.msk [vmem:[%s2918_s18 + $0x18] sm:$0xff] %vm397_vm0, %v1760_v39  ;;  %v1473_v44 = vpop.f32.mrb[11].mxu0 }
 0x471   : > { %1579 = vst.msk [vmem:[%s2918_s18 + $0x8] sm:$0xff] %vm397_vm0, %v1473_v44  ;;  %v1769_v10 = vpop.f32.mrb[8].mxu1 }
 0x472   : > { %1588 = vst.msk [vmem:[%s2918_s18 + $0x50] sm:$0xff] %vm397_vm0, %v1769_v10  ;;  %v1547_v4 = vpop.f32.mrb[9].mxu1 }
 0x473   : > { %1586 = vst.msk [vmem:[%s2918_s18 + $0x40] sm:$0xff] %vm397_vm0, %v1547_v4  ;;  %v1770_v25 = vpop.f32.mrb[10].mxu1 }
 0x474   : > { %1589 = vst.msk [vmem:[%s2918_s18 + $0x58] sm:$0xff] %vm397_vm0, %v1770_v25  ;;  %v1550_v22 = vpop.f32.mrb[11].mxu1 }
 0x475   : > { %1587 = vst.msk [vmem:[%s2918_s18 + $0x48] sm:$0xff] %vm397_vm0, %v1550_v22 }
 0x47f   : > { %v1763_v47 = vpop.f32.mrb[12].mxu0 }
 0x480   : > { %1584 = vst.msk [vmem:[%s2918_s18 + $0x30] sm:$0xff] %vm397_vm0, %v1763_v47  ;;  %v1486_v60 = vpop.f32.mrb[13].mxu0 }
 0x481   : > { %1582 = vst.msk [vmem:[%s2918_s18 + $0x20] sm:$0xff] %vm397_vm0, %v1486_v60  ;;  %v1764_v2 = vpop.f32.mrb[14].mxu0 }
 0x482   : > { %1585 = vst.msk [vmem:[%s2918_s18 + $0x38] sm:$0xff] %vm397_vm0, %v1764_v2  ;;  %v1489_v40 = vpop.f32.mrb[15].mxu0 }
 0x483   : > { %1583 = vst.msk [vmem:[%s2918_s18 + $0x28] sm:$0xff] %vm397_vm0, %v1489_v40 }
 0x48b   : > { %v1773_v55 = vpop.f32.mrb[12].mxu1 }
 0x48c   : > { %1592 = vst.msk [vmem:[%s2918_s18 + $0x70] sm:$0xff] %vm397_vm0, %v1773_v55  ;;  %v1563_v21 = vpop.f32.mrb[13].mxu1 }
 0x48d   : > { %1590 = vst.msk [vmem:[%s2918_s18 + $0x60] sm:$0xff] %vm397_vm0, %v1563_v21  ;;  %v1774_v16 = vpop.f32.mrb[14].mxu1 }
 0x48e   : > { %1593 = vst.msk [vmem:[%s2918_s18 + $0x78] sm:$0xff] %vm397_vm0, %v1774_v16  ;;  %v1566_v0 = vpop.f32.mrb[15].mxu1 }
 0x48f   : > { %1591 = vst.msk [vmem:[%s2918_s18 + $0x68] sm:$0xff] %vm397_vm0, %v1566_v0 }
 0x490 PF: > { %s18_s27 = sadd.s32 1, %s1897_s27  }
 0x491   : > { %p15_p4 = scmp.ge.s32.totalorder %s18_s27, 4  }
 0x493   :  { %17 = sbr.rel (!%p15_p4) target bundleno = 1 (0x1), region = 88 }

// kernel: forward.5
= control target key start
LH: loop header
LB: loop body
LE: loop exit
PB: predicated region body
PF: predicated region fallthrough
CT: control target
= control target key end

     0   :  { %14 = vsyncpa [#allocation3], 0  ;;  %s2119_s0 = inlined_call_operand.vmem [shape: f32[32,128], index: 0, kind: input, shape index: {}]   ;;  %s2120_s1 = inlined_call_operand.vmem [shape: f32[32,128], index: 1, kind: input, shape index: {}]   ;;  %s2121_s2 = inlined_call_operand.vmem [shape: f32[1,128], index: 2, kind: input, shape index: {}]   ;;  %s2122_s3 = inlined_call_operand.vmem [shape: bf16[128,128], index: 3, kind: input, shape index: {}]   ;;  %s2123_s4 = inlined_call_operand.vmem [shape: f32[1,128], index: 4, kind: input, shape index: {}]   ;;  %s2124_s5 = inlined_call_operand.vmem [shape: bf16[128,512], index: 5, kind: input, shape index: {}]   ;;  %s2125_s6 = inlined_call_operand.vmem [shape: f32[1,512], index: 6, kind: input, shape index: {}]   ;;  %s2126_s7 = inlined_call_operand.vmem [shape: bf16[512,128], index: 7, kind: input, shape index: {}]   ;;  %s2127_s8 = inlined_call_operand.vmem [shape: f32[1,128], index: 8, kind: input, shape index: {}]   ;;  %s2128_s9 = inlined_call_operand.hbm [shape: f32[32,128], index: 9, kind: output, shape index: {}]  }
   0x1   :  { %16 = vsyncpa [#allocation3 + $0x1], 0  ;;  %s1751_s30 = smov 0   ;;  %s1753_s10 = smov 0  }
   0x2   :  { %s1755_s11 = smov 0   ;;  %s1757_s12 = smov 0  }
   0x3 LB: > { %s1772_s13 = sadd.s32 4294967295, %s1693_s12   ;;  %s1300_s14 = sadd.s32 4294967294, %s1693_s12   ;;  %s1693_s12 = sphi %s1757_s12, %s2134_s12   ;;  %s1689_s11 = sphi %s1755_s11, %s2133_s11   ;;  %s1685_s10 = sphi %s1753_s10, %s2132_s10   ;;  %s1681_s30 = sphi %s1751_s30, %s2131_s30  }
   0x4   : > { %s1776_s15 = sadd.s32 1, %s1693_s12   ;;  %s228_s16 = sadd.s32 1, %s1689_s11 }
   0x5   : > { %s225_s17 = ssub.s32 %s1693_s12, %s1776_s15  ;;  %p238_p0 = scmp.ne.s32.totalorder %s1689_s11, %s1685_s10 }
   0x6   : > { %p226_p1 = scmp.eq.s32.totalorder %s225_s17, 0  ;;  %p239_p2 = scmp.eq.s32.totalorder %s1772_s13, 1 }
   0x7   : > { %p244_p3 = scmp.ne.s32.totalorder %s1685_s10, %s1681_s30  ;;  %p245_p4 = scmp.eq.s32.totalorder %s1300_s14, 1 }
   0x8   : > { %s1787_s18 = scalar_select %p226_p1, %s1689_s11, %s228_s16  }
   0x9   : > { %p1789_p5 = por %p239_p2, %p238_p0  ;;  %p1793_p6 = por %p245_p4, %p244_p3 }
   0xa   : > { %p1303_p7 = scmp.ge.s32.totalorder %s1693_s12, 1  ;;  %p302_p8 = scmp.lt.s32.totalorder %s1693_s12, 3 }
   0xc   : > { %p303_p9 = pnand %p1303_p7, %p302_p8 }
   0xd   : > { %v1507_v0 = vld [vmem:[%s2122_s3] sm:$0xff] (!%p303_p9)   ;;  %v1695_v1 = vmov (!%p303_p9), 0.0   ;;  %v1508_v2 = vld [vmem:[%s2122_s3 + $0x8] sm:$0xff] (!%p303_p9)   ;;  %vm1696_vm0 = vmmov (!%p303_p9), 0   ;;  %v1509_v3 = vld [vmem:[%s2122_s3 + $0x10] sm:$0xff] (!%p303_p9)   ;;  %s1305_s27 = sshll.u32 (!%p303_p9), %s1772_s13, 1 }
   0xe   : > { %306 = sbr.rel (%p303_p9) target bundleno = 923 (0x39b), region = 56  ;;  %1443 = vmatprep.subr.bf16.mxu0 (!%p303_p9), %v1695_v1  ;;  %1459 = vmatprep.mubr.msk.bf16.mxu0 (!%p303_p9), %vm1696_vm0, %v1695_v1  ;;  %v1510_v4 = vld [vmem:[%s2122_s3 + $0x18] sm:$0xff] (!%p303_p9)   ;;  %p344_p10 = scmp.lt.s32.totalorder (!%p303_p9), %s1305_s27, 3  ;;  %v1511_v5 = vld [vmem:[%s2122_s3 + $0x20] sm:$0xff] (!%p303_p9)   ;;  %v1512_v6 = vld [vmem:[%s2122_s3 + $0x28] sm:$0xff] (!%p303_p9)   ;;  %v1697_v51 = vmov (!%p303_p9), 0  }
   0xf   : > { %1444 = vmatpush3.bf16.msra.mxu0 (!%p303_p9), %v1507_v0  ;;  %v1513_v7 = vld [vmem:[%s2122_s3 + $0x30] sm:$0xff] (!%p303_p9)   ;;  %v1514_v8 = vld [vmem:[%s2122_s3 + $0x38] sm:$0xff] (!%p303_p9)   ;;  %v1309_v20 = vld [vmem:[%s2123_s4] ss:$0 sm:$0xff] (!%p303_p9)  ;;  %747 = vmatprep.mubr.bf16.mxu1 (!%p303_p9), %v1697_v51  ;;  %s1698_s26 = smov (!%p303_p9), [#allocation2]  }
  0x10   : > { %1445 = vmatprep.subr.bf16.mxu0 (!%p303_p9), %v1695_v1  ;;  %v1515_v12 = vld [vmem:[%s2124_s5 + $0x4] ss:$16 sps:$4 sm:$0xff] (!%p303_p9)   ;;  %v1517_v13 = vld [vmem:[%s2124_s5 + $0x8] ss:$16 sps:$4 sm:$0xff] (!%p303_p9)   ;;  %v1519_v14 = vld [vmem:[%s2124_s5 + $0xc] ss:$16 sps:$4 sm:$0xff] (!%p303_p9)  }
  0x11   : > { %v1520_v15 = vld [vmem:[%s2124_s5] ss:$16 sps:$4 sm:$0xff] (!%p303_p9)   ;;  %v1521_v16 = vld [vmem:[%s2124_s5 + $0x24] ss:$16 sps:$4 sm:$0xff] (!%p303_p9)   ;;  %715 = vmatprep.subr.bf16.mxu1 (!%p303_p9), %v1515_v12  ;;  %v1525_v17 = vld [vmem:[%s2124_s5 + $0x2c] ss:$16 sps:$4 sm:$0xff] (!%p303_p9)  }
  0x12   : > { %716 = vmatpush1.bf16.msra.mxu1 (!%p303_p9), %v1520_v15  ;;  %v1523_v18 = vld [vmem:[%s2124_s5 + $0x28] ss:$16 sps:$4 sm:$0xff] (!%p303_p9)   ;;  %v1526_v19 = vld [vmem:[%s2124_s5 + $0x20] ss:$16 sps:$4 sm:$0xff] (!%p303_p9)   ;;  %v1527_v33 = vld [vmem:[%s2124_s5 + $0x44] ss:$16 sps:$4 sm:$0xff] (!%p303_p9)  }
  0x13   : > { %1446 = vmatpush3.bf16.msra.mxu0 (!%p303_p9), %v1508_v2  ;;  %717 = vmatprep.subr.bf16.mxu1 (!%p303_p9), %v1521_v16  ;;  %v1531_v34 = vld [vmem:[%s2124_s5 + $0x4c] ss:$16 sps:$4 sm:$0xff] (!%p303_p9)   ;;  %v1529_v35 = vld [vmem:[%s2124_s5 + $0x48] ss:$16 sps:$4 sm:$0xff] (!%p303_p9)   ;;  %v1532_v36 = vld [vmem:[%s2124_s5 + $0x40] ss:$16 sps:$4 sm:$0xff] (!%p303_p9)  }
  0x14   : > { %1447 = vmatprep.subr.bf16.mxu0 (!%p303_p9), %v1695_v1  ;;  %v1533_v37 = vld [vmem:[%s2124_s5 + $0x64] ss:$16 sps:$4 sm:$0xff] (!%p303_p9)   ;;  %v1537_v38 = vld [vmem:[%s2124_s5 + $0x6c] ss:$16 sps:$4 sm:$0xff] (!%p303_p9)   ;;  %v1535_v39 = vld [vmem:[%s2124_s5 + $0x68] ss:$16 sps:$4 sm:$0xff] (!%p303_p9)  }
  0x15   : > { %s2136_s27 = smov (!%p344_p10, %s1305_s27), 3  ;;  %v1538_v40 = vld [vmem:[%s2124_s5 + $0x60] ss:$16 sps:$4 sm:$0xff]   ;;  %v1539_v41 = vld [vmem:[%s2124_s5 + $0x84] ss:$16 sps:$4 sm:$0xff]   ;;  %v1567_v12 = vld [vmem:[%s2126_s7 + $0x48] sm:$0xff]  }
  0x16   : > { %s1306_s22 = sshll.u32 %s2136_s27, 3  ;;  %718 = vmatpush1.bf16.msra.mxu1 %v1526_v19  ;;  %v1543_v42 = vld [vmem:[%s2124_s5 + $0x8c] ss:$16 sps:$4 sm:$0xff]   ;;  %v1541_v43 = vld [vmem:[%s2124_s5 + $0x88] ss:$16 sps:$4 sm:$0xff]   ;;  %v1571_v16 = vld [vmem:[%s2126_s7 + $0x50] sm:$0xff]  }
  0x17   : > { %1448 = vmatpush3.bf16.msra.mxu0 %v1509_v3  ;;  %s353_s28 = scalar_lea.vmem %s2120_s1, %s1306_s22  ;;  %s347_s29 = scalar_lea.vmem %s2119_s0, %s1306_s22  ;;  %719 = vmatprep.subr.bf16.mxu1 %v1527_v33  ;;  %v1544_v44 = vld [vmem:[%s2124_s5 + $0x80] ss:$16 sps:$4 sm:$0xff]   ;;  %v1545_v45 = vld [vmem:[%s2124_s5 + $0xa4] ss:$16 sps:$4 sm:$0xff]   ;;  %v1549_v46 = vld [vmem:[%s2124_s5 + $0xac] ss:$16 sps:$4 sm:$0xff]  }
  0x18   : > { %1449 = vmatprep.subr.bf16.mxu0 %v1695_v1  ;;  %v357_v9 = vld [vmem:[%s353_s28] sm:$0xff]  ;;  %v358_v10 = vld [vmem:[%s353_s28 + $0x8] sm:$0xff]  ;;  %v1574_v19 = vld [vmem:[%s2126_s7 + $0x90] sm:$0xff]   ;;  %s340_s28 = sand.u32 1, %s1685_s10   ;;  %s1389_s27 = sshll.u32 %s1772_s13, 8 }
  0x19   : > { %v359_v11 = vpack.c.bf16 %v358_v10, %v357_v9  ;;  %v472_v22 = vld [vmem:[%s347_s29] sm:$0xff]  ;;  %v473_v26 = vld [vmem:[%s347_s29 + $0x8] sm:$0xff]  ;;  %s1304_s29 = sshll.u32 %s340_s28, 4  ;;  %s2074_s24 = scalar_lea.hbm %s2128_s9, %s1389_s27 }
  0x1a   : > { %720 = vmatpush1.bf16.msra.mxu1 %v1532_v36  ;;  %v1547_v47 = vld [vmem:[%s2124_s5 + $0xa8] ss:$16 sps:$4 sm:$0xff]   ;;  %v1550_v48 = vld [vmem:[%s2124_s5 + $0xa0] ss:$16 sps:$4 sm:$0xff]   ;;  %v1551_v49 = vld [vmem:[%s2124_s5 + $0xc4] ss:$16 sps:$4 sm:$0xff]  }
  0x1b   : > { %1450 = vmatpush3.bf16.msra.mxu0 %v1510_v4  ;;  %721 = vmatprep.subr.bf16.mxu1 %v1533_v37  ;;  %v1555_v50 = vld [vmem:[%s2124_s5 + $0xcc] ss:$16 sps:$4 sm:$0xff]   ;;  %v1553_v52 = vld [vmem:[%s2124_s5 + $0xc8] ss:$16 sps:$4 sm:$0xff]   ;;  %v1556_v53 = vld [vmem:[%s2124_s5 + $0xc0] ss:$16 sps:$4 sm:$0xff]  }
  0x1c   : > { %1451 = vmatprep.subr.bf16.mxu0 %v1695_v1  ;;  %v1557_v54 = vld [vmem:[%s2124_s5 + $0xe4] ss:$16 sps:$4 sm:$0xff]   ;;  %v1561_v55 = vld [vmem:[%s2124_s5 + $0xec] ss:$16 sps:$4 sm:$0xff]   ;;  %v1559_v56 = vld [vmem:[%s2124_s5 + $0xe8] ss:$16 sps:$4 sm:$0xff]  }
  0x1d   : > { %v1562_v57 = vld [vmem:[%s2124_s5 + $0xe0] ss:$16 sps:$4 sm:$0xff]   ;;  %v1570_v15 = vld [vmem:[%s2126_s7 + $0x88] sm:$0xff]   ;;  %s342_s22 = scalar_lea.vmem [#allocation2], %s1304_s29  ;;  %s2078_s25 = scalar_lea.sflag [#allocation3], %s340_s28 }
  0x1e   : > { %722 = vmatpush1.bf16.msra.mxu1 %v1538_v40  ;;  %v1318_v3 = vld [vmem:[%s2121_s2] ss:$0 sm:$0xff]  ;;  %v1586_v33 = vld [vmem:[%s2126_s7 + $0xa8] sm:$0xff]   ;;  %v1589_v36 = vld [vmem:[%s2126_s7 + $0x30] sm:$0xff]   ;;  %s1226_s17 = sshll.u32 %s342_s22, 4  ;;  %s1635_s29 = sshll.u32 %s1698_s26, 4  ;;  %s2076_s17 = int_to_ptr.vmem [resolvable:$true] %s1226_s17  ;;  %s1636_s29 = int_to_ptr.vmem [resolvable:$false] %s1635_s29 }
  0x1f   : > { %1452 = vmatpush3.bf16.msra.mxu0 %v1511_v5  ;;  %723 = vmatprep.subr.bf16.mxu1 %v1539_v41  ;;  %v1564_v9 = vld [vmem:[%s2126_s7 + $0xc0] sm:$0xff]   ;;  %v1590_v37 = vld [vmem:[%s2126_s7 + $0xb0] sm:$0xff]   ;;  %v1593_v40 = vld [vmem:[%s2126_s7 + $0x38] sm:$0xff]   ;;  %s1631_s13 = scalar_lea.vmem %s2076_s17, 256  ;;  %s1637_s14 = scalar_lea.vmem %s1636_s29, 512 }
  0x20   : > { %1453 = vmatprep.subr.bf16.mxu0 %v1695_v1  ;;  %v1565_v10 = vld [vmem:[%s2126_s7] sm:$0xff]   ;;  %v1594_v41 = vld [vmem:[%s2126_s7 + $0xb8] sm:$0xff]   ;;  %p1632_p11 = scmp.ne.s32.totalorder %s2076_s17, %s1631_s13  ;;  %p1638_p0 = scmp.lt.s32.totalorder %s2076_s17, %s1636_s29 }
  0x21   : > { %p1639_p1 = scmp.lt.s32.totalorder %s1637_s14, %s1631_s13 }
  0x22   : > { %724 = vmatpush1.bf16.msra.mxu1 %v1544_v44  ;;  %p1633_p12 = pnand %p1632_p11, %p1789_p5 }
  0x23   : > { %1454 = vmatpush3.bf16.msra.mxu0 %v1512_v6  ;;  %725 = vmatprep.subr.bf16.mxu1 %v1545_v45  ;;  %p1640_p2 = por %p1639_p1, %p1638_p0 }
  0x24   : > { %1455 = vmatprep.subr.bf16.mxu0 %v1695_v1  ;;  %p1634_p13 = pneg %p1633_p12 }
  0x26   : > { %726 = vmatpush1.bf16.msra.mxu1 %v1550_v48  ;;  %p1641_p3 = pnand %p1640_p2, %p1634_p13 }
  0x27   : > { %1456 = vmatpush3.bf16.msra.mxu0 %v1513_v7  ;;  %727 = vmatprep.subr.bf16.mxu1 %v1551_v49 }
  0x28   : > { %1457 = vmatprep.subr.bf16.mxu0 %v1695_v1 }
  0x2a   : > { %728 = vmatpush1.bf16.msra.mxu1 %v1556_v53 }
  0x2b   : > { %1458 = vmatpush3.bf16.msra.mxu0 %v1514_v8  ;;  %729 = vmatprep.subr.bf16.mxu1 %v1557_v54  ;;  %v1563_v8 = vld [vmem:[%s2126_s7 + $0x40] sm:$0xff]  }
  0x2c   : > { %758 = vmatprep.subr.bf16.mxu0 %v1519_v14  ;;  %v1569_v14 = vld [vmem:[%s2126_s7 + $0x8] sm:$0xff]  }
  0x2e   : > { %1460 = vmatmul.mubr.bf16.vlgmr.msra.gmra.mrb[0].mxu0 %v359_v11  ;;  %730 = vmatpush1.bf16.msra.mxu1 %v1562_v57  ;;  %v1566_v11 = vld [vmem:[%s2126_s7 + $0x80] sm:$0xff]  }
  0x2f   : > { %759 = vmatpush1.bf16.msra.mxu0 %v1517_v13  ;;  %790 = vmatprep.mubr.bf16.mxu0 %v1697_v51  ;;  %v1568_v13 = vld [vmem:[%s2126_s7 + $0xc8] sm:$0xff]  }
  0x30   : > { %760 = vmatprep.subr.bf16.mxu0 %v1525_v17  ;;  %1399 = vmatprep.subr.bf16.mxu1 %v1563_v8  ;;  %v1572_v17 = vld [vmem:[%s2126_s7 + $0xd0] sm:$0xff]  }
  0x33   : > { %761 = vmatpush1.bf16.msra.mxu0 %v1523_v18  ;;  %v1573_v18 = vld [vmem:[%s2126_s7 + $0x10] sm:$0xff]  }
  0x34   : > { %762 = vmatprep.subr.bf16.mxu0 %v1531_v34  ;;  %v1587_v34 = vld [vmem:[%s2126_s7 + $0x70] sm:$0xff]  }
  0x37   : > { %763 = vmatpush1.bf16.msra.mxu0 %v1529_v35  ;;  %v1588_v35 = vld [vmem:[%s2126_s7 + $0xf0] sm:$0xff]  }
  0x38   : > { %764 = vmatprep.subr.bf16.mxu0 %v1537_v38  ;;  %v1591_v38 = vld [vmem:[%s2126_s7 + $0x78] sm:$0xff]  }
  0x3b   : > { %765 = vmatpush1.bf16.msra.mxu0 %v1535_v39  ;;  %v1592_v39 = vld [vmem:[%s2126_s7 + $0xf8] sm:$0xff]  }
  0x3c   : > { %766 = vmatprep.subr.bf16.mxu0 %v1543_v42  ;;  %v535_v42 = vlaneseq }
  0x3f   : > { %767 = vmatpush1.bf16.msra.mxu0 %v1541_v43  ;;  %v536_v43 = vshrl.u32 %v535_v42, 7 }
  0x40   : > { %768 = vmatprep.subr.bf16.mxu0 %v1549_v46  ;;  %v533_v46 = vld [vmem:[%s2125_s6] sm:$0xf] }
  0x41   : > { %v537_v44 = vsub.s32 0, %v536_v43  ;;  %v545_v45 = vsub.s32 2, %v536_v43  ;;  %v549_v48 = vsub.s32 3, %v536_v43 }
  0x43   : > { %769 = vmatpush1.bf16.msra.mxu0 %v1547_v47  ;;  %v541_v47 = vsub.s32 1, %v536_v43  ;;  %v538_v49 = vrot.slane %v533_v46, %v537_v44 }
  0x44   : > { %770 = vmatprep.subr.bf16.mxu0 %v1555_v50  ;;  %v546_v50 = vrot.slane %v533_v46, %v545_v45 }
  0x45   : > { %v542_v51 = vrot.slane %v533_v46, %v541_v47 }
  0x47   : > { %771 = vmatpush1.bf16.msra.mxu0 %v1553_v52  ;;  %v550_v52 = vrot.slane %v533_v46, %v549_v48 }
  0x48   : > { %772 = vmatprep.subr.bf16.mxu0 %v1561_v55 }
  0x4b   : > { %773 = vmatpush1.bf16.msra.mxu0 %v1559_v56 }
  0x4c   : > { %1421 = vmatprep.subr.bf16.mxu0 %v1564_v9 }
 0x101   : > { %v465_v21 = vpop.f32.mrb[0].mxu0 }
 0x102   : > { %v466_v23 = vadd.f32 %v1309_v20, %v465_v21  ;;  %v1461_v24 = vpop.f32.mrb[1].mxu0  ;;  %v1576_v21 = vld [vmem:[%s2126_s7 + $0xd8] sm:$0xff]  }
 0x103   : > { %v468_v25 = vpop.f32.mrb[2].mxu0  ;;  %v1579_v24 = vld [vmem:[%s2126_s7 + $0x60] sm:$0xff]  }
 0x104   : > { %v1864_v27 = vadd.f32 %v472_v22, %v466_v23  ;;  %v469_v28 = vadd.f32 %v1309_v20, %v468_v25  ;;  %v1462_v29 = vpop.f32.mrb[3].mxu0  ;;  %v1575_v20 = vld [vmem:[%s2126_s7 + $0x58] sm:$0xff]   ;;  %v1580_v25 = vld [vmem:[%s2126_s7 + $0xe0] sm:$0xff]  }
 0x105   : > { %v1577_v22 = vld [vmem:[%s2126_s7 + $0x18] sm:$0xff]   ;;  %v1583_v29 = vld [vmem:[%s2126_s7 + $0x68] sm:$0xff]  }
 0x106   : > { %v1866_v30 = vadd.f32 %v473_v26, %v469_v28  ;;  %v476_v31 = vmul.f32 %v1864_v27, %v1864_v27  ;;  %v1578_v23 = vld [vmem:[%s2126_s7 + $0x98] sm:$0xff]   ;;  %v1581_v26 = vld [vmem:[%s2126_s7 + $0x20] sm:$0xff]  }
 0x107   : > { %v1582_v28 = vld [vmem:[%s2126_s7 + $0xa0] sm:$0xff]  }
 0x108   : > { %478 = vadd.xlane.f32.xlu0 %v476_v31  ;;  %v477_v32 = vmul.f32 %v1866_v30, %v1866_v30  ;;  %v1584_v31 = vld [vmem:[%s2126_s7 + $0xe8] sm:$0xff]  }
 0x10c   : > { %480 = vadd.xlane.f32.xlu0 %v477_v32  ;;  %v1585_v32 = vld [vmem:[%s2126_s7 + $0x28] sm:$0xff]  }
 0x195   : > { %v479_v58 = vpop.xlane.xlu0 %478 }
 0x196   : > { %v483_v59 = vmul.f32 0.0078125, %v479_v58 }
 0x198   : > { %v485_v60 = vadd.f32 1.1920929e-07, %v483_v59 }
 0x199   : > { %v481_v61 = vpop.xlane.xlu0 %480 }
 0x19a   : > { %1595 = vrsqrt.f32 %v485_v60  ;;  %v484_v62 = vmul.f32 0.0078125, %v481_v61 }
 0x19c   : > { %v486_v63 = vadd.f32 1.1920929e-07, %v484_v62 }
 0x19e   : > { %1597 = vrsqrt.f32 %v486_v63 }
 0x1a4   : > { %v1596_v0 = vpop.eup %1595 }
 0x1a5   : > { %v489_v1 = vmul.f32 %v1596_v0, %v1864_v27 }
 0x1a7   : > { %v498_v5 = vmul.f32 %v1318_v3, %v489_v1 }
 0x1a8   : > { %v1598_v2 = vpop.eup %1597 }
 0x1a9   : > { %v490_v4 = vmul.f32 %v1598_v2, %v1866_v30 }
 0x1ab   : > { %v499_v6 = vmul.f32 %v1318_v3, %v490_v4 }
 0x1ad   : > { %v500_v7 = vpack.c.bf16 %v499_v6, %v498_v5 }
 0x1af   : > { %748 = vmatmul.mubr.bf16.vlgmr.msra.gmra.mrb[0].mxu1 %v500_v7  ;;  %791 = vmatmul.mubr.bf16.vlgmr.msra.gmra.mrb[4].mxu0 %v500_v7 }
 0x1b0   : > { %1400 = vmatpush3.bf16.msra.mxu1 %v1565_v10  ;;  %1422 = vmatpush3.bf16.msra.mxu0 %v1566_v11 }
 0x1b1   : > { %1401 = vmatprep.subr.bf16.mxu1 %v1567_v12  ;;  %1423 = vmatprep.subr.bf16.mxu0 %v1568_v13 }
 0x1b4   : > { %1402 = vmatpush3.bf16.msra.mxu1 %v1569_v14  ;;  %1424 = vmatpush3.bf16.msra.mxu0 %v1570_v15 }
 0x1b5   : > { %1403 = vmatprep.subr.bf16.mxu1 %v1571_v16  ;;  %1425 = vmatprep.subr.bf16.mxu0 %v1572_v17 }
 0x1b8   : > { %1404 = vmatpush3.bf16.msra.mxu1 %v1573_v18  ;;  %1426 = vmatpush3.bf16.msra.mxu0 %v1574_v19 }
 0x1b9   : > { %1405 = vmatprep.subr.bf16.mxu1 %v1575_v20  ;;  %1427 = vmatprep.subr.bf16.mxu0 %v1576_v21 }
 0x1bc   : > { %1406 = vmatpush3.bf16.msra.mxu1 %v1577_v22  ;;  %1428 = vmatpush3.bf16.msra.mxu0 %v1578_v23 }
 0x1bd   : > { %1407 = vmatprep.subr.bf16.mxu1 %v1579_v24  ;;  %1429 = vmatprep.subr.bf16.mxu0 %v1580_v25 }
 0x1c0   : > { %1408 = vmatpush3.bf16.msra.mxu1 %v1581_v26  ;;  %1430 = vmatpush3.bf16.msra.mxu0 %v1582_v28 }
 0x1c1   : > { %1409 = vmatprep.subr.bf16.mxu1 %v1583_v29  ;;  %1431 = vmatprep.subr.bf16.mxu0 %v1584_v31 }
 0x1c4   : > { %1410 = vmatpush3.bf16.msra.mxu1 %v1585_v32  ;;  %1432 = vmatpush3.bf16.msra.mxu0 %v1586_v33 }
 0x1c5   : > { %1411 = vmatprep.subr.bf16.mxu1 %v1587_v34  ;;  %1433 = vmatprep.subr.bf16.mxu0 %v1588_v35 }
 0x1c8   : > { %1412 = vmatpush3.bf16.msra.mxu1 %v1589_v36  ;;  %1434 = vmatpush3.bf16.msra.mxu0 %v1590_v37 }
 0x1c9   : > { %1413 = vmatprep.subr.bf16.mxu1 %v1591_v38  ;;  %1435 = vmatprep.subr.bf16.mxu0 %v1592_v39 }
 0x1cc   : > { %1414 = vmatpush3.bf16.msra.mxu1 %v1593_v40  ;;  %1436 = vmatpush3.bf16.msra.mxu0 %v1594_v41 }
 0x282   : > { %v749_v53 = vpop.f32.mrb[0].mxu1  ;;  %v792_v54 = vpop.f32.mrb[4].mxu0 }
 0x283   : > { %v2048_v55 = vadd.f32 %v749_v53, %v538_v49  ;;  %v2050_v56 = vadd.f32 %v792_v54, %v546_v50  ;;  %v751_v57 = vpop.f32.mrb[1].mxu1  ;;  %v794_v58 = vpop.f32.mrb[5].mxu0 }
 0x284   : > { %v2052_v59 = vadd.f32 %v751_v57, %v542_v51  ;;  %v2054_v60 = vadd.f32 %v794_v58, %v550_v52  ;;  %v753_v61 = vpop.f32.mrb[2].mxu1  ;;  %v796_v62 = vpop.f32.mrb[6].mxu0 }
 0x285   : > { %v801_v63 = vsub.f32 0.0, %v2048_v55  ;;  %v803_v0 = vsub.f32 0.0, %v2050_v56  ;;  %v754_v1 = vadd.f32 %v753_v61, %v538_v49  ;;  %v797_v2 = vadd.f32 %v796_v62, %v546_v50  ;;  %v755_v3 = vpop.f32.mrb[3].mxu1  ;;  %v798_v4 = vpop.f32.mrb[7].mxu0 }
 0x286   : > { %v802_v5 = vsub.f32 0.0, %v2052_v59  ;;  %v804_v6 = vsub.f32 0.0, %v2054_v60  ;;  %v756_v7 = vadd.f32 %v755_v3, %v542_v51  ;;  %v799_v8 = vadd.f32 %v798_v4, %v550_v52 }
 0x287   : > { %v809_v9 = vmul.f32 1.442695, %v801_v63  ;;  %v813_v10 = vmul.f32 1.442695, %v803_v0  ;;  %v805_v11 = vsub.f32 0.0, %v754_v1  ;;  %v807_v12 = vsub.f32 0.0, %v797_v2 }
 0x288   : > { %v811_v13 = vmul.f32 1.442695, %v802_v5  ;;  %v815_v14 = vmul.f32 1.442695, %v804_v6  ;;  %v806_v15 = vsub.f32 0.0, %v756_v7  ;;  %v808_v16 = vsub.f32 0.0, %v799_v8 }
 0x289   : > { %1599 = vpow2.f32 %v809_v9  ;;  %v817_v17 = vmul.f32 1.442695, %v805_v11  ;;  %v821_v18 = vmul.f32 1.442695, %v807_v12 }
 0x28a   : > { %1601 = vpow2.f32 %v813_v10  ;;  %v819_v19 = vmul.f32 1.442695, %v806_v15  ;;  %v823_v20 = vmul.f32 1.442695, %v808_v16 }
 0x28b   : > { %1603 = vpow2.f32 %v811_v13 }
 0x28c   : > { %1605 = vpow2.f32 %v815_v14 }
 0x28d   : > { %1607 = vpow2.f32 %v817_v17 }
 0x28e   : > { %1609 = vpow2.f32 %v821_v18 }
 0x28f   : > { %1611 = vpow2.f32 %v819_v19 }
 0x290   : > { %1613 = vpow2.f32 %v823_v20 }
 0x293   : > { %v1600_v21 = vpop.eup %1599 }
 0x294   : > { %v1602_v22 = vpop.eup %1601  ;;  %v825_v23 = vadd.f32 1.0, %v1600_v21 }
 0x295   : > { %v1604_v24 = vpop.eup %1603  ;;  %v827_v25 = vadd.f32 1.0, %v1602_v22 }
 0x296   : > { %v1606_v26 = vpop.eup %1605  ;;  %1615 = vrcp.f32 %v825_v23  ;;  %v826_v28 = vadd.f32 1.0, %v1604_v24 }
 0x297   : > { %v1608_v29 = vpop.eup %1607  ;;  %1617 = vrcp.f32 %v827_v25  ;;  %v828_v31 = vadd.f32 1.0, %v1606_v26 }
 0x298   : > { %v1610_v32 = vpop.eup %1609  ;;  %1619 = vrcp.f32 %v826_v28  ;;  %v829_v33 = vadd.f32 1.0, %v1608_v29 }
 0x299   : > { %v1612_v34 = vpop.eup %1611  ;;  %1621 = vrcp.f32 %v828_v31  ;;  %v831_v35 = vadd.f32 1.0, %v1610_v32 }
 0x29a   : > { %v1614_v36 = vpop.eup %1613  ;;  %1623 = vrcp.f32 %v829_v33  ;;  %v830_v37 = vadd.f32 1.0, %v1612_v34 }
 0x29b   : > { %1625 = vrcp.f32 %v831_v35  ;;  %v832_v38 = vadd.f32 1.0, %v1614_v36 }
 0x29c   : > { %1627 = vrcp.f32 %v830_v37 }
 0x29d   : > { %1629 = vrcp.f32 %v832_v38 }
 0x2a0   : > { %v1616_v39 = vpop.eup %1615 }
 0x2a1   : > { %v1618_v40 = vpop.eup %1617  ;;  %v849_v45 = vmul.f32 %v1616_v39, %v2048_v55 }
 0x2a2   : > { %v1620_v41 = vpop.eup %1619  ;;  %v851_v48 = vmul.f32 %v1618_v40, %v2050_v56 }
 0x2a3   : > { %v1622_v42 = vpop.eup %1621  ;;  %v850_v51 = vmul.f32 %v1620_v41, %v2052_v59 }
 0x2a4   : > { %v1624_v43 = vpop.eup %1623  ;;  %v852_v54 = vmul.f32 %v1622_v42, %v2054_v60 }
 0x2a5   : > { %v1626_v44 = vpop.eup %1625  ;;  %v853_v46 = vmul.f32 %v1624_v43, %v754_v1 }
 0x2a6   : > { %v1628_v47 = vpop.eup %1627  ;;  %v855_v49 = vmul.f32 %v1626_v44, %v797_v2 }
 0x2a7   : > { %v1630_v50 = vpop.eup %1629  ;;  %v857_v52 = vpack.c.bf16 %v853_v46, %v849_v45  ;;  %v854_v53 = vmul.f32 %v1628_v47, %v756_v7 }
 0x2a8   : > { %v859_v57 = vpack.c.bf16 %v855_v49, %v851_v48  ;;  %v856_v58 = vmul.f32 %v1630_v50, %v799_v8  ;;  %v1383_v8 = vld [vmem:[%s2127_s8] ss:$0 sm:$0xff] }
 0x2a9   : > { %v858_v61 = vpack.c.bf16 %v854_v53, %v850_v51 }
 0x2aa   : > { %v860_v62 = vpack.c.bf16 %v856_v58, %v852_v54 }
 0x2ab   : > { %1149 = vmatprep.mubr.bf16.mxu1 %v858_v61 }
 0x2ac   : > { %1190 = vmatprep.mubr.bf16.mxu0 %v860_v62  ;;  %1150 = vmatmul.mubr.bf16.vlgmr.msra.gmra.mrb[4].mxu1 %v857_v52 }
 0x2ad   : > { %1191 = vmatmul.mubr.bf16.vlgmr.msra.gmra.mrb[8].mxu0 %v859_v57 }
 0x37f   : > { %v1415_v55 = vpop.f32.mrb[4].mxu1 }
 0x380   : > { %v1437_v63 = vpop.f32.mrb[8].mxu0  ;;  %v1416_v56 = vpop.f32.mrb[5].mxu1 }
 0x381   : > { %v1417_v0 = vadd.f32 %v1416_v56, %v1415_v55  ;;  %v1438_v59 = vpop.f32.mrb[9].mxu0  ;;  %v1418_v1 = vpop.f32.mrb[6].mxu1 }
 0x382   : > { %v1439_v2 = vadd.f32 %v1438_v59, %v1437_v63  ;;  %v1440_v3 = vpop.f32.mrb[10].mxu0  ;;  %v1419_v60 = vpop.f32.mrb[7].mxu1 }
 0x383   : > { %v1420_v4 = vadd.f32 %v1419_v60, %v1418_v1  ;;  %v1441_v5 = vpop.f32.mrb[11].mxu0 }
 0x384   : > { %v1193_v6 = vadd.f32 %v1439_v2, %v1417_v0  ;;  %v1442_v7 = vadd.f32 %v1441_v5, %v1440_v3 }
 0x386   : > { %v1199_v9 = vadd.f32 %v1193_v6, %v1864_v27  ;;  %v1196_v10 = vadd.f32 %v1442_v7, %v1420_v4 }
 0x388   : > { %v1208_v11 = vadd.f32 %v1383_v8, %v1199_v9  ;;  %v1200_v12 = vadd.f32 %v1196_v10, %v1866_v30 }
 0x38a   : > { %1210 = vst [vmem:[%s342_s22] sm:$0xff] %v1208_v11  ;;  %v1209_v13 = vadd.f32 %v1383_v8, %v1200_v12 }
 0x38c   : > { %1211 = vst [vmem:[%s342_s22 + $0x8] sm:$0xff] %v1209_v13 }
 0x38d   : > { %1644 = shalt.err (!%p1641_p3)
}
 0x38e   : > { %s1645_s28 = scalar_lea.hbm %s2074_s24, 256  ;;  %s1649_s22 = scalar_lea.hbm %s2128_s9, 512 }
 0x38f   : > { %p1646_p4 = scmp.ne.s32.totalorder %s2074_s24, %s1645_s28  ;;  %p1650_p9 = scmp.lt.u32.totalorder %s2074_s24, %s2128_s9 }
 0x390   : > { %p1651_p10 = scmp.lt.u32.totalorder %s1649_s22, %s1645_s28  ;;  %p1653_p12 = scmp.lt.u32.totalorder %s1645_s28, %s2074_s24 }
 0x391   : > { %p1647_p7 = pnand %p1646_p4, %p1789_p5 }
 0x392   : > { %p1652_p11 = por %p1651_p10, %p1650_p9 }
 0x393   : > { %p1648_p8 = pneg %p1647_p7 }
 0x394   : > { %p1654_p13 = por %p1653_p12, %p1652_p11 }
 0x396   : > { %p1655_p0 = pnand %p1654_p13, %p1648_p8 }
 0x398   : > { %1658 = shalt.err (!%p1655_p0)
}
 0x399   : > { %s1699_s13 = smov 128   ;;  %s1700_s26 = smov 8  }
 0x39a   : > { %1463 = dma.vmem_to_hbm [thread:$0]  (%p1789_p5), %s2076_s17, 256, %s2074_s24, %s2078_s25, %s1699_s13, %s1699_s13, %s1700_s26  }
 0x39b PF: > { %p1469_p1 = scmp.ge.s32.totalorder %s1693_s12, 2  ;;  %s1241_s29 = sand.u32 1, %s1681_s30  }
 0x39c   : > { %s1242_s14 = scalar_lea.sflag [#allocation3], %s1241_s29 }
 0x39d   : > { %p1466_p2 = pnand %p1469_p1, %p1793_p6 }
 0x39f   : > { %1676 = dma.done.wait (!%p1466_p2), %s1242_s14, 256  }
 0x3a0   : > { %1678 = vsyncadd (!%p1466_p2), %s1242_s14, 4294967040  ;;  %p19_p3 = scmp.ge.s32.totalorder %s1776_s15, 4   ;;  %s2131_s30 = smov %s1685_s10 }
 0x3a1   : > { %s2132_s10 = smov %s1689_s11  ;;  %s2133_s11 = smov %s1787_s18 }
 0x3a2   : > { %s2134_s12 = smov %s1776_s15  ;;  %21 = sbr.rel (!%p19_p3) target bundleno = 3 (0x3), region = 94 }
 0x3a9   :  { %1247 = vsyncpa [#allocation3], 1 }
 0x3aa   :  { %1249 = vsyncpa [#allocation3 + $0x1], 1 }

</bundles_post_ra>
